<compile_context>
chip_gen: v5e
topology: v5e:2x2
jax: 0.10.0
libtpu: 0.0.40
codegen_flags: <defaults>
</compile_context>

<pallas_src>
import jax
import jax.numpy as jnp
from jax.experimental import pallas as pl
from jax.experimental.pallas import tpu as pltpu


# -----------------------------------------------------------------------------
# Parameter initialization (deterministic, PyTorch-Linear-style uniform init).
# Weights stored as [in_dim, out_dim] so that y = x @ W + b.
# -----------------------------------------------------------------------------
def _init_linear(key, in_dim, out_dim):
    kw, kb = jax.random.split(key)
    bound = 1.0 / jnp.sqrt(jnp.asarray(in_dim, jnp.float32))
    w = jax.random.uniform(kw, (in_dim, out_dim), jnp.float32, -bound, bound)
    b = jax.random.uniform(kb, (1, out_dim), jnp.float32, -bound, bound)
    return w, b


def init_nerf_decoder_params(key, latent_dim=32, input_dim=2, output_dim=1):
    keys = jax.random.split(key, 9)
    params = {}
    # mlp_x: Linear(in,128) ReLU, Linear(128,256) ReLU, Linear(256,32)
    params["wx1"], params["bx1"] = _init_linear(keys[0], input_dim, 128)
    params["wx2"], params["bx2"] = _init_linear(keys[1], 128, 256)
    params["wx3"], params["bx3"] = _init_linear(keys[2], 256, 32)
    # mlp_z: Linear(L,2L) ReLU, Linear(2L,2L) ReLU, Linear(2L,32)
    params["wz1"], params["bz1"] = _init_linear(keys[3], latent_dim, 2 * latent_dim)
    params["wz2"], params["bz2"] = _init_linear(keys[4], 2 * latent_dim, 2 * latent_dim)
    params["wz3"], params["bz3"] = _init_linear(keys[5], 2 * latent_dim, 32)
    # joint_mlp: Linear(64,128) ReLU, Linear(128,256) ReLU, Linear(256,out), Softplus
    params["wj1"], params["bj1"] = _init_linear(keys[6], 64, 128)
    params["wj2"], params["bj2"] = _init_linear(keys[7], 128, 256)
    params["wj3"], params["bj3"] = _init_linear(keys[8], 256, output_dim)
    return params


# -----------------------------------------------------------------------------
# Pallas kernel: one (batch element, row tile) per grid point, feature-major.
# -----------------------------------------------------------------------------
def _softplus(x):
    # numerically stable softplus (torch uses identity above threshold=20; diff ~2e-9)
    return jnp.maximum(x, 0.0) + jnp.log1p(jnp.exp(-jnp.abs(x)))


def _nerf_decoder_kernel(
    x_ref,      # [1, in_dim, TILE]   f32
    zb_ref,     # [1, 128, 1]         f32  (mlp_z + fused biases, per batch)
    wx1t_ref,   # [128, in_dim]       f32
    bx1c_ref,   # [128, 1]            f32
    wx2t_ref,   # [256, 128]          bf16
    bx2c_ref,   # [256, 1]            f32
    wxjt_ref,   # [128, 256]          bf16 (fused wx3 @ wj1[:32], transposed)
    wj2t_ref,   # [256, 128]          bf16
    bj2c_ref,   # [256, 1]            f32
    wj3t_ref,   # [out_dim, 256]      f32
    bj3c_ref,   # [out_dim, 1]        f32
    out_ref,    # [1, 1, out_dim, TILE]
):
    f32 = jnp.float32
    bf16 = jnp.bfloat16

    x_t = x_ref[0]                                   # [in_dim, TILE]
    in_dim = x_t.shape[0]

    # ---- mlp_x layer 1 (in_dim -> 128) on the VPU: K=2 matmul would waste an MXU pass ----
    h = bx1c_ref[...]                                # [128, 1]
    for k in range(in_dim):                          # static, tiny
        h = h + wx1t_ref[:, k:k + 1] * x_t[k:k + 1, :]
    h = jnp.maximum(h, 0.0)                          # [128, TILE]

    # ---- mlp_x layer 2 (128 -> 256), bf16 operands, f32 accumulation ----
    h = jnp.dot(wx2t_ref[...], h.astype(bf16), preferred_element_type=f32)
    h = jnp.maximum(h + bx2c_ref[...], 0.0)          # [256, TILE]

    # ---- fused: mlp_x layer 3 + concat(hx, hz) + joint layer 1 (256 -> 128) ----
    # z contribution (mlp_z output through wj1[32:]) is already folded into zb_ref.
    h = jnp.dot(wxjt_ref[...], h.astype(bf16), preferred_element_type=f32)
    h = jnp.maximum(h + zb_ref[0], 0.0)              # [128, TILE]

    # ---- joint layer 2 (128 -> 256) ----
    h = jnp.dot(wj2t_ref[...], h.astype(bf16), preferred_element_type=f32)
    h = jnp.maximum(h + bj2c_ref[...], 0.0)          # [256, TILE]

    # ---- joint layer 3 (256 -> out_dim) + softplus; lane-dense [out_dim, TILE] store ----
    o = jnp.dot(wj3t_ref[...], h, preferred_element_type=f32) + bj3c_ref[...]
    out_ref[...] = _softplus(o)[None, None]          # [1, 1, out_dim, TILE]


def _pick_tile(n):
    # biggest lane-aligned tile that divides the spatial size
    for t in (1024, 512, 384, 256, 128):
        if n % t == 0:
            return t
    return n  # fallback: one block spanning the whole row axis


def nerf_decoder_forward(params, x, z, *, tile=None, use_bf16=True):
    """x: [B, H, W, input_dim], z: [B, latent_dim] -> [B, H, W, output_dim]."""
    B, H, W, in_dim = x.shape
    N = H * W
    if tile is None:
        tile = _pick_tile(N)
    assert N % tile == 0, "tile must divide H*W"
    assert tile % 128 == 0 or tile == N, "tile must be lane-aligned or cover the whole grid"

    out_dim = params["wj3"].shape[-1]
    dx = params["wx3"].shape[-1]        # width of mlp_x head (first half of the concat)
    j1 = params["wj1"].shape[-1]        # joint hidden width (128)

    relu = jax.nn.relu
    f32 = jnp.float32
    wdt = jnp.bfloat16 if use_bf16 else f32

    # ---- exact algebraic fusion of wx3 / wz3 into the first joint layer ----
    wj1 = params["wj1"]
    Wxj = params["wx3"] @ wj1[:dx]                                         # [256, 128]
    Wzj = params["wz3"] @ wj1[dx:]                                         # [2L, 128]
    b_fused = params["bx3"] @ wj1[:dx] + params["bz3"] @ wj1[dx:] + params["bj1"]   # [1, 128]

    # ---- mlp_z (tiny per-batch MLP) folded into a per-batch bias column ----
    hz = relu(z @ params["wz1"] + params["bz1"])
    hz = relu(hz @ params["wz2"] + params["bz2"])
    z_bias = (hz @ Wzj + b_fused).astype(f32)                              # [B, 128]
    z_bias_fm = z_bias.reshape(B, j1, 1)

    # ---- feature-major weights (transposed once; dominant matmul operands in bf16) ----
    wx1t = params["wx1"].T.astype(f32)       # [128, in_dim]
    bx1c = params["bx1"].T.astype(f32)       # [128, 1]
    wx2t = params["wx2"].T.astype(wdt)       # [256, 128]
    bx2c = params["bx2"].T.astype(f32)       # [256, 1]
    wxjt = Wxj.T.astype(wdt)                 # [128, 256]
    wj2t = params["wj2"].T.astype(wdt)       # [256, 128]
    bj2c = params["bj2"].T.astype(f32)       # [256, 1]
    wj3t = params["wj3"].T.astype(f32)       # [out_dim, 256]
    bj3c = params["bj3"].T.astype(f32)       # [out_dim, 1]
    weight_args = [wx1t, bx1c, wx2t, bx2c, wxjt, wj2t, bj2c, wj3t, bj3c]

    # feature-major spatial input: [B, in_dim, N]
    x_fm = jnp.swapaxes(x.reshape(B, N, in_dim).astype(f32), 1, 2)

    num_tiles = N // tile
    grid = (B, num_tiles)   # both axes independent -> "parallel" (v7x dual-TC sharding)

    def full2d(arr):
        return pl.BlockSpec(arr.shape, lambda b, t: (0, 0))

    flops = 2 * B * N * (in_dim * 128 + 128 * 256 + 256 * 128 + 128 * 256 + 256 * out_dim)
    transcendentals = 2 * B * N * out_dim
    bytes_accessed = int(
        sum(int(a.size) * a.dtype.itemsize for a in [x_fm, z_bias_fm] + weight_args)
        + B * N * out_dim * 4
    )

    out = pl.pallas_call(
        _nerf_decoder_kernel,
        out_shape=jax.ShapeDtypeStruct((B, num_tiles, out_dim, tile), jnp.float32),
        grid_spec=pltpu.PrefetchScalarGridSpec(
            num_scalar_prefetch=0,
            grid=grid,
            in_specs=[
                pl.BlockSpec((1, in_dim, tile), lambda b, t: (b, 0, t)),   # x rows (feature-major)
                pl.BlockSpec((1, j1, 1), lambda b, t: (b, 0, 0)),          # per-batch z bias column
            ] + [full2d(w) for w in weight_args],
            out_specs=pl.BlockSpec((1, 1, out_dim, tile), lambda b, t: (b, t, 0, 0)),
        ),
        compiler_params=pltpu.CompilerParams(
            dimension_semantics=("parallel", "parallel"),
        ),
        cost_estimate=pl.CostEstimate(
            flops=int(flops),
            transcendentals=int(transcendentals),
            bytes_accessed=bytes_accessed,
        ),
    )(x_fm, z_bias_fm, *weight_args)

    # (B, num_tiles, out_dim, tile) -> (B, H, W, out_dim)
    out = jnp.swapaxes(out, 2, 3).reshape(B, H, W, out_dim)
    return out


# -----------------------------------------------------------------------------
# Plain-JAX reference (exact f32 semantics of the PyTorch module).
# -----------------------------------------------------------------------------
def nerf_decoder_reference(params, x, z):
    relu = jax.nn.relu
    hx = relu(x @ params["wx1"] + params["bx1"])
    hx = relu(hx @ params["wx2"] + params["bx2"])
    hx = hx @ params["wx3"] + params["bx3"]
    hz = relu(z @ params["wz1"] + params["bz1"])
    hz = relu(hz @ params["wz2"] + params["bz2"])
    hz = hz @ params["wz3"] + params["bz3"]
    # _expand_z: z [B, 32] -> [B, 1, 1, 32] -> broadcast to x's spatial shape
    hz = hz.reshape(hz.shape[0], *([1] * (hx.ndim - 2)), hz.shape[-1])
    hz = jnp.broadcast_to(hz, hx.shape[:-1] + (hz.shape[-1],))
    xz = jnp.concatenate([hx, hz], axis=-1)
    h = relu(xz @ params["wj1"] + params["bj1"])
    h = relu(h @ params["wj2"] + params["bj2"])
    o = h @ params["wj3"] + params["bj3"]
    return jax.nn.softplus(o)


if __name__ == "__main__":
    key = jax.random.PRNGKey(0)
    kp, kx, kz = jax.random.split(key, 3)

    B, H, W = 2, 16, 16
    latent_dim, input_dim, output_dim = 32, 2, 1

    params = init_nerf_decoder_params(kp, latent_dim, input_dim, output_dim)
    x = jax.random.normal(kx, (B, H, W, input_dim), jnp.float32)
    z = jax.random.normal(kz, (B, latent_dim), jnp.float32)

    out = nerf_decoder_forward(params, x, z)     # tile auto-selected (256 here)
    out = jax.block_until_ready(out)

    ref = nerf_decoder_reference(params, x, z)
    assert out.shape == (B, H, W, output_dim)
    # tolerance loosened for bf16 matmul operands (f32 accumulation); error << 1e-2 in practice
    assert jnp.allclose(out, ref, atol=2e-2, rtol=2e-2), "mismatch vs reference"

    print("KERNEL_OK")
</pallas_src>

<mosaic_0001>
module attributes {stable_mosaic.version = 11 : i64} {
  func.func @_nerf_decoder_kernel(%arg0: i32, %arg1: i32, %arg2: memref<1x2x256xf32, #tpu.memory_space<vmem>>, %arg3: memref<1x128x1xf32, #tpu.memory_space<vmem>>, %arg4: memref<128x2xf32, #tpu.memory_space<vmem>>, %arg5: memref<128x1xf32, #tpu.memory_space<vmem>>, %arg6: memref<256x128xbf16, #tpu.memory_space<vmem>>, %arg7: memref<256x1xf32, #tpu.memory_space<vmem>>, %arg8: memref<128x256xbf16, #tpu.memory_space<vmem>>, %arg9: memref<256x128xbf16, #tpu.memory_space<vmem>>, %arg10: memref<256x1xf32, #tpu.memory_space<vmem>>, %arg11: memref<1x256xf32, #tpu.memory_space<vmem>>, %arg12: memref<1x1xf32, #tpu.memory_space<vmem>>, %arg13: memref<1x1x1x256xf32, #tpu.memory_space<vmem>>) attributes {dimension_semantics = [#tpu.dimension_semantics<parallel>, #tpu.dimension_semantics<parallel>], iteration_bounds = array<i64: 2, 1>, scalar_prefetch = 0 : i64, scratch_operands = 0 : i64, tpu.core_type = #tpu.core_type<tc>, window_params = [{transform_indices = @transform_0, window_bounds = array<i64: 1, 2, 256>}, {transform_indices = @transform_1, window_bounds = array<i64: 1, 128, 1>}, {pipeline_mode = #tpu.pipeline_mode<synchronous>, transform_indices = @transform_2, window_bounds = array<i64: 128, 2>}, {pipeline_mode = #tpu.pipeline_mode<synchronous>, transform_indices = @transform_3, window_bounds = array<i64: 128, 1>}, {pipeline_mode = #tpu.pipeline_mode<synchronous>, transform_indices = @transform_4, window_bounds = array<i64: 256, 128>}, {pipeline_mode = #tpu.pipeline_mode<synchronous>, transform_indices = @transform_5, window_bounds = array<i64: 256, 1>}, {pipeline_mode = #tpu.pipeline_mode<synchronous>, transform_indices = @transform_6, window_bounds = array<i64: 128, 256>}, {pipeline_mode = #tpu.pipeline_mode<synchronous>, transform_indices = @transform_7, window_bounds = array<i64: 256, 128>}, {pipeline_mode = #tpu.pipeline_mode<synchronous>, transform_indices = @transform_8, window_bounds = array<i64: 256, 1>}, {pipeline_mode = #tpu.pipeline_mode<synchronous>, transform_indices = @transform_9, window_bounds = array<i64: 1, 256>}, {pipeline_mode = #tpu.pipeline_mode<synchronous>, transform_indices = @transform_10, window_bounds = array<i64: 1, 1>}, {transform_indices = @transform_11, window_bounds = array<i64: 1, 1, 1, 256>}]} {
    %c0 = arith.constant 0 : index
    %c0_0 = arith.constant 0 : index
    %c0_1 = arith.constant 0 : index
    %0 = vector.load %arg2[%c0, %c0_0, %c0_1] : memref<1x2x256xf32, #tpu.memory_space<vmem>>, vector<1x2x256xf32>
    %1 = vector.shape_cast %0 : vector<1x2x256xf32> to vector<2x256xf32>
    %c0_2 = arith.constant 0 : index
    %c0_3 = arith.constant 0 : index
    %2 = vector.load %arg5[%c0_2, %c0_3] : memref<128x1xf32, #tpu.memory_space<vmem>>, vector<128x1xf32>
    %c0_4 = arith.constant 0 : index
    %c0_5 = arith.constant 0 : index
    %3 = vector.load %arg4[%c0_4, %c0_5] : memref<128x2xf32, #tpu.memory_space<vmem>>, vector<128x1xf32>
    %4 = vector.extract_strided_slice %1 {offsets = [0, 0], sizes = [1, 256], strides = [1, 1]} : vector<2x256xf32> to vector<1x256xf32>
    %5 = vector.broadcast %3 : vector<128x1xf32> to vector<128x256xf32>
    %6 = vector.broadcast %4 : vector<1x256xf32> to vector<128x256xf32>
    %7 = arith.mulf %5, %6 : vector<128x256xf32>
    %8 = vector.broadcast %2 : vector<128x1xf32> to vector<128x256xf32>
    %9 = arith.addf %8, %7 : vector<128x256xf32>
    %c0_6 = arith.constant 0 : index
    %c1 = arith.constant 1 : index
    %10 = vector.load %arg4[%c0_6, %c1] : memref<128x2xf32, #tpu.memory_space<vmem>>, vector<128x1xf32>
    %11 = vector.extract_strided_slice %1 {offsets = [1, 0], sizes = [1, 256], strides = [1, 1]} : vector<2x256xf32> to vector<1x256xf32>
    %12 = vector.broadcast %10 : vector<128x1xf32> to vector<128x256xf32>
    %13 = vector.broadcast %11 : vector<1x256xf32> to vector<128x256xf32>
    %14 = arith.mulf %12, %13 : vector<128x256xf32>
    %15 = arith.addf %9, %14 : vector<128x256xf32>
    %cst = arith.constant 0.000000e+00 : f32
    %16 = vector.broadcast %cst : f32 to vector<128x256xf32>
    %17 = arith.maximumf %15, %16 : vector<128x256xf32>
    %c0_7 = arith.constant 0 : index
    %c0_8 = arith.constant 0 : index
    %18 = vector.load %arg6[%c0_7, %c0_8] : memref<256x128xbf16, #tpu.memory_space<vmem>>, vector<256x128xbf16>
    %19 = arith.truncf %17 : vector<128x256xf32> to vector<128x256xbf16>
    %cst_9 = arith.constant dense<0.000000e+00> : vector<256x256xf32>
    %20 = tpu.matmul %18, %19, %cst_9 {dimension_numbers = #tpu.dot_dimension_numbers<[1], [0], [0], [1], [0, 0, 1, 1], [], []>} : vector<256x128xbf16>, vector<128x256xbf16>, vector<256x256xf32> -> vector<256x256xf32>
    %c0_10 = arith.constant 0 : index
    %c0_11 = arith.constant 0 : index
    %21 = vector.load %arg7[%c0_10, %c0_11] : memref<256x1xf32, #tpu.memory_space<vmem>>, vector<256x1xf32>
    %22 = vector.broadcast %21 : vector<256x1xf32> to vector<256x256xf32>
    %23 = arith.addf %20, %22 : vector<256x256xf32>
    %cst_12 = arith.constant 0.000000e+00 : f32
    %24 = vector.broadcast %cst_12 : f32 to vector<256x256xf32>
    %25 = arith.maximumf %23, %24 : vector<256x256xf32>
    %c0_13 = arith.constant 0 : index
    %c0_14 = arith.constant 0 : index
    %26 = vector.load %arg8[%c0_13, %c0_14] : memref<128x256xbf16, #tpu.memory_space<vmem>>, vector<128x256xbf16>
    %27 = arith.truncf %25 : vector<256x256xf32> to vector<256x256xbf16>
    %cst_15 = arith.constant dense<0.000000e+00> : vector<128x256xf32>
    %28 = tpu.matmul %26, %27, %cst_15 {dimension_numbers = #tpu.dot_dimension_numbers<[1], [0], [0], [1], [0, 0, 1, 1], [], []>} : vector<128x256xbf16>, vector<256x256xbf16>, vector<128x256xf32> -> vector<128x256xf32>
    %c0_16 = arith.constant 0 : index
    %c0_17 = arith.constant 0 : index
    %c0_18 = arith.constant 0 : index
    %29 = vector.load %arg3[%c0_16, %c0_17, %c0_18] : memref<1x128x1xf32, #tpu.memory_space<vmem>>, vector<1x128x1xf32>
    %30 = vector.shape_cast %29 : vector<1x128x1xf32> to vector<128x1xf32>
    %31 = vector.broadcast %30 : vector<128x1xf32> to vector<128x256xf32>
    %32 = arith.addf %28, %31 : vector<128x256xf32>
    %cst_19 = arith.constant 0.000000e+00 : f32
    %33 = vector.broadcast %cst_19 : f32 to vector<128x256xf32>
    %34 = arith.maximumf %32, %33 : vector<128x256xf32>
    %c0_20 = arith.constant 0 : index
    %c0_21 = arith.constant 0 : index
    %35 = vector.load %arg9[%c0_20, %c0_21] : memref<256x128xbf16, #tpu.memory_space<vmem>>, vector<256x128xbf16>
    %36 = arith.truncf %34 : vector<128x256xf32> to vector<128x256xbf16>
    %cst_22 = arith.constant dense<0.000000e+00> : vector<256x256xf32>
    %37 = tpu.matmul %35, %36, %cst_22 {dimension_numbers = #tpu.dot_dimension_numbers<[1], [0], [0], [1], [0, 0, 1, 1], [], []>} : vector<256x128xbf16>, vector<128x256xbf16>, vector<256x256xf32> -> vector<256x256xf32>
    %c0_23 = arith.constant 0 : index
    %c0_24 = arith.constant 0 : index
    %38 = vector.load %arg10[%c0_23, %c0_24] : memref<256x1xf32, #tpu.memory_space<vmem>>, vector<256x1xf32>
    %39 = vector.broadcast %38 : vector<256x1xf32> to vector<256x256xf32>
    %40 = arith.addf %37, %39 : vector<256x256xf32>
    %cst_25 = arith.constant 0.000000e+00 : f32
    %41 = vector.broadcast %cst_25 : f32 to vector<256x256xf32>
    %42 = arith.maximumf %40, %41 : vector<256x256xf32>
    %c0_26 = arith.constant 0 : index
    %c0_27 = arith.constant 0 : index
    %43 = vector.load %arg11[%c0_26, %c0_27] : memref<1x256xf32, #tpu.memory_space<vmem>>, vector<1x256xf32>
    %cst_28 = arith.constant dense<0.000000e+00> : vector<1x256xf32>
    %44 = tpu.matmul %43, %42, %cst_28 {dimension_numbers = #tpu.dot_dimension_numbers<[1], [0], [0], [1], [0, 0, 1, 1], [], []>} : vector<1x256xf32>, vector<256x256xf32>, vector<1x256xf32> -> vector<1x256xf32>
    %c0_29 = arith.constant 0 : index
    %c0_30 = arith.constant 0 : index
    %45 = vector.load %arg12[%c0_29, %c0_30] : memref<1x1xf32, #tpu.memory_space<vmem>>, vector<1x1xf32>
    %46 = vector.broadcast %45 : vector<1x1xf32> to vector<1x256xf32>
    %47 = arith.addf %44, %46 : vector<1x256xf32>
    %cst_31 = arith.constant 0.000000e+00 : f32
    %48 = vector.broadcast %cst_31 : f32 to vector<1x256xf32>
    %49 = arith.maximumf %47, %48 : vector<1x256xf32>
    %50 = math.absf %47 : vector<1x256xf32>
    %cst_32 = arith.constant 0.000000e+00 : f32
    %51 = vector.broadcast %cst_32 : f32 to vector<1x256xf32>
    %52 = arith.subf %51, %50 : vector<1x256xf32>
    %53 = math.exp %52 : vector<1x256xf32>
    %54 = math.log1p %53 : vector<1x256xf32>
    %55 = arith.addf %49, %54 : vector<1x256xf32>
    %56 = vector.shape_cast %55 : vector<1x256xf32> to vector<1x1x1x256xf32>
    %c0_33 = arith.constant 0 : index
    %c0_34 = arith.constant 0 : index
    %c0_35 = arith.constant 0 : index
    %c0_36 = arith.constant 0 : index
    %57 = vector.load %arg13[%c0_33, %c0_34, %c0_35, %c0_36] : memref<1x1x1x256xf32, #tpu.memory_space<vmem>>, vector<1x1x1x256xf32>
    tpu.vector_store %arg13[%c0_33, %c0_34, %c0_35, %c0_36], %56 {strides = array<i32>} : memref<1x1x1x256xf32, #tpu.memory_space<vmem>>, vector<1x1x1x256xf32>,
    return
  }
  func.func @transform_0(%arg0: i32, %arg1: i32) -> (i32, i32, i32) {
    %c0_i32 = arith.constant 0 : i32
    %c0_i32_0 = arith.constant 0 : i32
    return %arg0, %c0_i32, %arg1 : i32, i32, i32
  }
  func.func @transform_1(%arg0: i32, %arg1: i32) -> (i32, i32, i32) {
    %c0_i32 = arith.constant 0 : i32
    %c0_i32_0 = arith.constant 0 : i32
    %c0_i32_1 = arith.constant 0 : i32
    return %arg0, %c0_i32, %c0_i32_0 : i32, i32, i32
  }
  func.func @transform_2(%arg0: i32, %arg1: i32) -> (i32, i32) {
    %c0_i32 = arith.constant 0 : i32
    %c0_i32_0 = arith.constant 0 : i32
    %c0_i32_1 = arith.constant 0 : i32
    return %c0_i32, %c0_i32_0 : i32, i32
  }
  func.func @transform_3(%arg0: i32, %arg1: i32) -> (i32, i32) {
    %c0_i32 = arith.constant 0 : i32
    %c0_i32_0 = arith.constant 0 : i32
    %c0_i32_1 = arith.constant 0 : i32
    return %c0_i32, %c0_i32_0 : i32, i32
  }
  func.func @transform_4(%arg0: i32, %arg1: i32) -> (i32, i32) {
    %c0_i32 = arith.constant 0 : i32
    %c0_i32_0 = arith.constant 0 : i32
    %c0_i32_1 = arith.constant 0 : i32
    return %c0_i32, %c0_i32_0 : i32, i32
  }
  func.func @transform_5(%arg0: i32, %arg1: i32) -> (i32, i32) {
    %c0_i32 = arith.constant 0 : i32
    %c0_i32_0 = arith.constant 0 : i32
    %c0_i32_1 = arith.constant 0 : i32
    return %c0_i32, %c0_i32_0 : i32, i32
  }
  func.func @transform_6(%arg0: i32, %arg1: i32) -> (i32, i32) {
    %c0_i32 = arith.constant 0 : i32
    %c0_i32_0 = arith.constant 0 : i32
    %c0_i32_1 = arith.constant 0 : i32
    return %c0_i32, %c0_i32_0 : i32, i32
  }
  func.func @transform_7(%arg0: i32, %arg1: i32) -> (i32, i32) {
    %c0_i32 = arith.constant 0 : i32
    %c0_i32_0 = arith.constant 0 : i32
    %c0_i32_1 = arith.constant 0 : i32
    return %c0_i32, %c0_i32_0 : i32, i32
  }
  func.func @transform_8(%arg0: i32, %arg1: i32) -> (i32, i32) {
    %c0_i32 = arith.constant 0 : i32
    %c0_i32_0 = arith.constant 0 : i32
    %c0_i32_1 = arith.constant 0 : i32
    return %c0_i32, %c0_i32_0 : i32, i32
  }
  func.func @transform_9(%arg0: i32, %arg1: i32) -> (i32, i32) {
    %c0_i32 = arith.constant 0 : i32
    %c0_i32_0 = arith.constant 0 : i32
    %c0_i32_1 = arith.constant 0 : i32
    return %c0_i32, %c0_i32_0 : i32, i32
  }
  func.func @transform_10(%arg0: i32, %arg1: i32) -> (i32, i32) {
    %c0_i32 = arith.constant 0 : i32
    %c0_i32_0 = arith.constant 0 : i32
    %c0_i32_1 = arith.constant 0 : i32
    return %c0_i32, %c0_i32_0 : i32, i32
  }
  func.func @transform_11(%arg0: i32, %arg1: i32) -> (i32, i32, i32, i32) {
    %c0_i32 = arith.constant 0 : i32
    %c0_i32_0 = arith.constant 0 : i32
    %c0_i32_1 = arith.constant 0 : i32
    return %arg0, %arg1, %c0_i32, %c0_i32_0 : i32, i32, i32, i32
  }
}

</mosaic_0001>

<bundles_post_ra>
// kernel: tpu_custom_call.1
= control target key start
LH: loop header
LB: loop body
LE: loop exit
PB: predicated region body
PF: predicated region fallthrough
CT: control target
= control target key end

     0   :  { %s4611_s0 = inlined_call_operand.vmem [shape: f32[2,2,256], index: 0, kind: input, shape index: {}]   ;;  %s4612_s1 = inlined_call_operand.vmem [shape: f32[2,128,1], index: 1, kind: input, shape index: {}]   ;;  %s4613_s2 = inlined_call_operand.vmem [shape: f32[128,2], index: 2, kind: input, shape index: {}]   ;;  %s4614_s3 = inlined_call_operand.vmem [shape: f32[128,1], index: 3, kind: input, shape index: {}]   ;;  %s4615_s4 = inlined_call_operand.vmem [shape: bf16[256,128], index: 4, kind: input, shape index: {}]   ;;  %s4616_s5 = inlined_call_operand.vmem [shape: f32[256,1], index: 5, kind: input, shape index: {}]   ;;  %s4617_s6 = inlined_call_operand.vmem [shape: bf16[128,256], index: 6, kind: input, shape index: {}]   ;;  %s4618_s7 = inlined_call_operand.vmem [shape: bf16[256,128], index: 7, kind: input, shape index: {}]   ;;  %s4619_s8 = inlined_call_operand.vmem [shape: f32[256,1], index: 8, kind: input, shape index: {}]   ;;  %s4620_s9 = inlined_call_operand.vmem [shape: f32[1,256], index: 9, kind: input, shape index: {}]   ;;  %s4621_s10 = inlined_call_operand.<no memory space> [shape: f32[1,1], index: 10, kind: input, shape index: {}]   ;;  %s4622_s11 = inlined_call_operand.hbm [shape: f32[2,1,1,256], index: 11, kind: output, shape index: {}]  }
   0x1   :  { %v16_v0 = vstv %s4621_s10 }
   0x2   :  { %17 = vst [vmem:[#allocation2] sm:$0x1] %v16_v0 }
   0x3   :  { %18 = vsyncpa [#allocation4], 0 }
   0x4   :  { %20 = vsyncpa [#allocation4 + $0x1], 0  ;;  %s3228_s19 = smov 0   ;;  %s3230_s20 = smov 0  }
   0x5   :  { %s3232_s21 = smov 0   ;;  %s3234_s22 = smov 0  }
   0x6   :  { %s3236_s23 = smov 0   ;;  %s3238_s24 = smov 0  }
   0x7 LB: > { %s2714_s10 = sadd.s32 4294967295, %s3161_s24   ;;  %s2715_s25 = sadd.s32 4294967294, %s3161_s24   ;;  %s3161_s24 = sphi %s3238_s24, %s26_s24   ;;  %s3157_s23 = sphi %s3236_s23, %s4677_s23   ;;  %s3153_s22 = sphi %s3234_s22, %s4676_s22   ;;  %s3149_s21 = sphi %s3232_s21, %s4675_s21   ;;  %s3145_s20 = sphi %s3230_s20, %s4674_s20   ;;  %s3141_s19 = sphi %s3228_s19, %s4673_s19  }
   0x8   : > { %s38_s26 = sadd.s32 1, %s3157_s23  ;;  %s290_s27 = sadd.s32 1, %s3149_s21 }
   0x9   : > { %p40_p0 = scmp.ge.s32.totalorder %s38_s26, 2  ;;  %p300_p1 = scmp.ne.s32.totalorder %s3149_s21, %s3145_s20 }
   0xa   : > { %p301_p2 = scmp.eq.s32.totalorder %s2714_s10, 1  ;;  %p306_p3 = scmp.ne.s32.totalorder %s3145_s20, %s3141_s19 }
   0xb   : > { %s4679_s26 = smov (%p40_p0, %s38_s26), 0  ;;  %p307_p5 = scmp.eq.s32.totalorder %s2715_s25, 1 }
   0xc   : > { %4630 = sst [smem:[#allocation6_spill]] %s4679_s26  ;;  %p3268_p4 = por %p301_p2, %p300_p1 }
   0xd   : > { %s285_s29 = ssub.s32 %s3157_s23, %s4679_s26  ;;  %p2718_p6 = scmp.ge.s32.totalorder %s3161_s24, 1 }
   0xe   : > { %p288_p7 = scmp.eq.s32.totalorder %s285_s29, 0  ;;  %p3275_p8 = por %p307_p5, %p306_p3 }
   0xf   : > { %p373_p9 = scmp.lt.s32.totalorder %s3161_s24, 3 }
  0x10   : > { %s3281_s12 = scalar_select %p288_p7, %s3149_s21, %s290_s27  }
  0x11   : > { %p374_p10 = pnand %p2718_p6, %p373_p9 }
  0x13   : > { %377 = sbr.rel (%p374_p10) target bundleno = 1569 (0x621), region = 64 }
  0x18   : > { %v468_v1 = vld [vmem:[%s4613_s2 + $0x70] sm:$0xff]  ;;  %v3163_v3 = vmov 0   ;;  %v3164_v4 = vmov 1   ;;  %v469_v5 = vld [vmem:[%s4613_s2 + $0x78] sm:$0xff]  ;;  %v466_v7 = vld [vmem:[%s4613_s2 + $0x60] sm:$0xff]  ;;  %p423_p11 = scmp.lt.s32.totalorder %s3153_s22, 1 }
  0x19   : > { %v452_v2 = vld [vmem:[%s4614_s3 + $0x70] sm:$0xff]  ;;  %3044 = vset.pattern.permute.xlu1 %v3163_v3  ;;  %3043 = vset.pattern.permute.xlu0 %v3163_v3  ;;  %v453_v6 = vld [vmem:[%s4614_s3 + $0x78] sm:$0xff]  ;;  %v467_v8 = vld [vmem:[%s4613_s2 + $0x68] sm:$0xff]  ;;  %vm2601_vm2 = vcmask 1040384   ;;  %s3103_s18 = scalar_lea.hbm %s4622_s11, 4 }
  0x1a   : > { %542 = vperm.xlu0 %3043, %v468_v1   ;;  %661 = vperm.xlu1 %3044, %v452_v2   ;;  %v450_v9 = vld [vmem:[%s4614_s3 + $0x60] sm:$0xff]  ;;  %v451_v10 = vld [vmem:[%s4614_s3 + $0x68] sm:$0xff]  ;;  %v464_v11 = vld [vmem:[%s4613_s2 + $0x50] sm:$0xff]  ;;  %s3381_s13 = scalar_select %p423_p11, %s3153_s22, 1 }
  0x1b   : > { %3045 = vset.pattern.permute.xlu2 %v3164_v4  ;;  %v465_v12 = vld [vmem:[%s4613_s2 + $0x58] sm:$0xff]  ;;  %v448_v13 = vld [vmem:[%s4614_s3 + $0x50] sm:$0xff]  ;;  %v462_v15 = vld [vmem:[%s4613_s2 + $0x40] sm:$0xff] }
  0x1c   : > { %758 = vperm.xlu2 %3045, %v468_v1   ;;  %v449_v14 = vld [vmem:[%s4614_s3 + $0x58] sm:$0xff]  ;;  %v463_v16 = vld [vmem:[%s4613_s2 + $0x48] sm:$0xff]  ;;  %v446_v17 = vld [vmem:[%s4614_s3 + $0x40] sm:$0xff]  ;;  %s2920_s16 = sshll.u32 %s3381_s13, 2  ;;  %s2921_s17 = sshll.u32 %s3381_s13, 7 }
  0x1d   : > { %v447_v18 = vld [vmem:[%s4614_s3 + $0x48] sm:$0xff]  ;;  %v460_v19 = vld [vmem:[%s4613_s2 + $0x30] sm:$0xff]  ;;  %v461_v20 = vld [vmem:[%s4613_s2 + $0x38] sm:$0xff]  ;;  %s430_s27 = scalar_lea.vmem %s4611_s0, %s2920_s16  ;;  %s3568_s29 = scalar_lea.vmem %s4612_s1, %s2921_s17 }
  0x1e   : > { %v445_v21 = vld [vmem:[%s4614_s3 + $0x38] sm:$0xff]  ;;  %v444_v22 = vld [vmem:[%s4614_s3 + $0x30] sm:$0xff]  ;;  %v458_v23 = vld [vmem:[%s4613_s2 + $0x20] sm:$0xff]  ;;  %s419_s16 = sand.u32 1, %s3145_s20  }
  0x1f   : > { %v459_v24 = vld [vmem:[%s4613_s2 + $0x28] sm:$0xff]  ;;  %v442_v26 = vld [vmem:[%s4614_s3 + $0x20] sm:$0xff]  ;;  %v456_v27 = vld [vmem:[%s4613_s2 + $0x10] sm:$0xff]  ;;  %s2719_s17 = sshll.u32 %s419_s16, 1  ;;  %s2610_s14 = scalar_lea.sflag [#allocation4], %s419_s16 }
  0x20   : > { %v443_v25 = vld [vmem:[%s4614_s3 + $0x28] sm:$0xff]  ;;  %v441_v29 = vld [vmem:[%s4614_s3 + $0x18] sm:$0xff]  ;;  %v440_v31 = vld [vmem:[%s4614_s3 + $0x10] sm:$0xff] }
  0x21   : > { %v457_v30 = vld [vmem:[%s4613_s2 + $0x18] sm:$0xff]  ;;  %v437_v32 = vld [vmem:[%s430_s27] sm:$0xf]  ;;  %v439_v44 = vld [vmem:[%s4614_s3 + $0x8] sm:$0xff]  ;;  %s421_s27 = scalar_lea.vmem [#allocation3], %s2719_s17 }
  0x22   : > { %547 = vperm.xlu0 %3043, %v469_v5   ;;  %666 = vperm.xlu1 %3044, %v453_v6   ;;  %v454_v34 = vld [vmem:[%s4613_s2] sm:$0xff]  ;;  %v551_v35 = vperm.slane %v437_v32, 0  ;;  %v552_v36 = vperm.slane %v437_v32, 2  ;;  %v765_v42 = vperm.slane %v437_v32, 1  ;;  %v766_v43 = vperm.slane %v437_v32, 3  ;;  %v455_v49 = vld [vmem:[%s4613_s2 + $0x8] sm:$0xff] }
  0x23   : > { %v438_v58 = vld [vmem:[%s4614_s3] sm:$0xff]  ;;  %v929_v63 = vld [vmem:[%s4616_s5 + $0x70] sm:$0xff] }
  0x24   : > { %762 = vperm.xlu2 %3045, %v469_v5   ;;  %v3402_v38 = vperm.slane %v551_v35, 0  ;;  %v3404_v39 = vperm.slane %v552_v36, 0  ;;  %v3415_v47 = vperm.slane %v765_v42, 1  ;;  %v3417_v48 = vperm.slane %v766_v43, 1 }
  0x2a   : > { %532 = vperm.xlu0 %3043, %v466_v7   ;;  %537 = vperm.xlu1 %3044, %v467_v8  }
  0x2c   : > { %3046 = vset.pattern.permute.xlu2 %v3163_v3 }
  0x2d   : > { %651 = vperm.xlu2 %3046, %v450_v9  }
  0x32   : > { %3047 = vset.pattern.permute.xlu1 %v3164_v4  ;;  %656 = vperm.xlu0 %3043, %v451_v10  }
  0x33   : > { %750 = vperm.xlu1 %3047, %v466_v7  }
  0x35   : > { %3048 = vset.pattern.permute.xlu2 %v3164_v4 }
  0x36   : > { %754 = vperm.xlu2 %3048, %v467_v8  }
  0x3a   : > { %522 = vperm.xlu0 %3043, %v464_v11  }
  0x3b   : > { %3049 = vset.pattern.permute.xlu1 %v3163_v3 }
  0x3c   : > { %527 = vperm.xlu1 %3049, %v465_v12  }
  0x3e   : > { %3050 = vset.pattern.permute.xlu2 %v3163_v3 }
  0x3f   : > { %641 = vperm.xlu2 %3050, %v448_v13  }
  0x42   : > { %646 = vperm.xlu0 %3043, %v449_v14  }
  0x44   : > { %3051 = vset.pattern.permute.xlu1 %v3164_v4 }
  0x45   : > { %742 = vperm.xlu1 %3051, %v464_v11  }
  0x47   : > { %3052 = vset.pattern.permute.xlu2 %v3164_v4 }
  0x48   : > { %746 = vperm.xlu2 %3052, %v465_v12  }
  0x4a   : > { %512 = vperm.xlu0 %3043, %v462_v15  }
  0x4d   : > { %3053 = vset.pattern.permute.xlu1 %v3163_v3 }
  0x4e   : > { %517 = vperm.xlu1 %3053, %v463_v16  }
  0x50   : > { %3054 = vset.pattern.permute.xlu2 %v3163_v3 }
  0x51   : > { %631 = vperm.xlu2 %3054, %v446_v17  }
  0x52   : > { %636 = vperm.xlu0 %3043, %v447_v18  }
  0x56   : > { %3055 = vset.pattern.permute.xlu1 %v3164_v4 }
  0x57   : > { %734 = vperm.xlu1 %3055, %v462_v15   ;;  %v946_v15 = vld [vmem:[%s4616_s5 + $0xf8] sm:$0xff] }
  0x59   : > { %3056 = vset.pattern.permute.xlu2 %v3164_v4 }
  0x5a   : > { %502 = vperm.xlu0 %3043, %v460_v19   ;;  %738 = vperm.xlu2 %3056, %v463_v16  }
  0x5f   : > { %3057 = vset.pattern.permute.xlu1 %v3163_v3 }
  0x60   : > { %507 = vperm.xlu1 %3057, %v461_v20  }
  0x62   : > { %626 = vperm.xlu0 %3043, %v445_v21   ;;  %3058 = vset.pattern.permute.xlu2 %v3163_v3 }
  0x63   : > { %621 = vperm.xlu2 %3058, %v444_v22  }
  0x68   : > { %3059 = vset.pattern.permute.xlu1 %v3164_v4 }
  0x69   : > { %726 = vperm.xlu1 %3059, %v460_v19  }
  0x6a   : > { %492 = vperm.xlu0 %3043, %v458_v23  }
  0x6b   : > { %3060 = vset.pattern.permute.xlu2 %v3164_v4 }
  0x6c   : > { %730 = vperm.xlu2 %3060, %v461_v20  }
  0x71   : > { %3061 = vset.pattern.permute.xlu1 %v3163_v3 }
  0x72   : > { %497 = vperm.xlu1 %3061, %v459_v24   ;;  %616 = vperm.xlu0 %3043, %v443_v25  }
  0x74   : > { %3062 = vset.pattern.permute.xlu2 %v3163_v3 }
  0x75   : > { %611 = vperm.xlu2 %3062, %v442_v26  }
  0x76   : > { %v759_v28 = vpop.permute.xlu2 %758 }
  0x77   : > { %v799_v56 = vmul.f32 %v3415_v47, %v759_v28  ;;  %v800_v57 = vmul.f32 %v3417_v48, %v759_v28 }
  0x7a   : > { %3063 = vset.pattern.permute.xlu1 %v3164_v4  ;;  %482 = vperm.xlu0 %3043, %v456_v27  }
  0x7b   : > { %718 = vperm.xlu1 %3063, %v458_v23  }
  0x7d   : > { %3064 = vset.pattern.permute.xlu2 %v3164_v4 }
  0x7e   : > { %722 = vperm.xlu2 %3064, %v459_v24   ;;  %v763_v33 = vpop.permute.xlu2 %762 }
  0x7f   : > { %v801_v59 = vmul.f32 %v3415_v47, %v763_v33  ;;  %v802_v60 = vmul.f32 %v3417_v48, %v763_v33  ;;  %v943_v33 = vld [vmem:[%s4616_s5 + $0xe0] sm:$0xff] }
  0x82   : > { %606 = vperm.xlu0 %3043, %v441_v29  }
  0x83   : > { %3065 = vset.pattern.permute.xlu1 %v3163_v3 }
  0x84   : > { %487 = vperm.xlu1 %3065, %v457_v30  }
  0x86   : > { %3066 = vset.pattern.permute.xlu2 %v3163_v3 }
  0x87   : > { %601 = vperm.xlu2 %3066, %v440_v31   ;;  %v3407_v41 = vpop.permute.xlu2 %651 }
  0x8a   : > { %472 = vperm.xlu0 %3043, %v454_v34  }
  0x8c   : > { %v543_v37 = vpop.permute.xlu0 %542  ;;  %3067 = vset.pattern.permute.xlu1 %v3164_v4  ;;  %v662_v40 = vpop.permute.xlu1 %661 }
  0x8d   : > { %710 = vperm.xlu1 %3067, %v456_v27   ;;  %v585_v45 = vmul.f32 %v3402_v38, %v543_v37  ;;  %v586_v46 = vmul.f32 %v3404_v39, %v543_v37  ;;  %v930_v27 = vld [vmem:[%s4616_s5 + $0x78] sm:$0xff] }
  0x8f   : > { %3068 = vset.pattern.permute.xlu2 %v3164_v4  ;;  %v697_v50 = vadd.f32 %v662_v40, %v585_v45  ;;  %v698_v51 = vadd.f32 %v662_v40, %v586_v46  ;;  %v945_v40 = vld [vmem:[%s4616_s5 + $0xf0] sm:$0xff] }
  0x90   : > { %714 = vperm.xlu2 %3068, %v457_v30   ;;  %v755_v0 = vpop.permute.xlu2 %754 }
  0x91   : > { %v831_v1 = vadd.f32 %v799_v56, %v697_v50  ;;  %v832_v2 = vadd.f32 %v800_v57, %v698_v51  ;;  %v797_v21 = vmul.f32 %v3415_v47, %v755_v0  ;;  %v798_v22 = vmul.f32 %v3417_v48, %v755_v0  ;;  %v926_v51 = vld [vmem:[%s4616_s5 + $0x58] sm:$0xff] }
  0x92   : > { %596 = vperm.xlu0 %3043, %v439_v44  }
  0x93   : > { %v863_v11 = vmax.f32 %v831_v1, 0.0  ;;  %v864_v12 = vmax.f32 %v832_v2, 0.0  ;;  %v923_v2 = vld [vmem:[%s4616_s5 + $0x40] sm:$0xff] }
  0x94   : > { %v548_v52 = vpop.permute.xlu0 %547  ;;  %v667_v53 = vpop.permute.xlu1 %666 }
  0x95   : > { %v587_v54 = vmul.f32 %v3402_v38, %v548_v52  ;;  %v588_v55 = vmul.f32 %v3404_v39, %v548_v52  ;;  %3069 = vset.pattern.permute.xlu1 %v3163_v3 }
  0x96   : > { %477 = vperm.xlu1 %3069, %v455_v49  }
  0x97   : > { %v699_v61 = vadd.f32 %v667_v53, %v587_v54  ;;  %v700_v62 = vadd.f32 %v667_v53, %v588_v55 }
  0x98   : > { %3070 = vset.pattern.permute.xlu2 %v3163_v3 }
  0x99   : > { %v833_v5 = vadd.f32 %v801_v59, %v699_v61  ;;  %v834_v6 = vadd.f32 %v802_v60, %v700_v62  ;;  %591 = vperm.xlu2 %3070, %v438_v58   ;;  %v642_v16 = vpop.permute.xlu2 %641  ;;  %v944_v61 = vld [vmem:[%s4616_s5 + $0xe8] sm:$0xff] }
  0x9a   : > { %1019 = vperm.xlu0 %3043, %v929_v63  }
  0x9b   : > { %v865_v7 = vmax.f32 %v833_v5, 0.0  ;;  %v866_v8 = vmax.f32 %v834_v6, 0.0 }
  0x9c   : > { %v533_v9 = vpop.permute.xlu0 %532  ;;  %v538_v10 = vpop.permute.xlu1 %537 }
  0x9d   : > { %v913_v13 = vpack.c.bf16 %v865_v7, %v863_v11  ;;  %v914_v14 = vpack.c.bf16 %v866_v8, %v864_v12  ;;  %v581_v17 = vmul.f32 %v3402_v38, %v533_v9  ;;  %v582_v18 = vmul.f32 %v3404_v39, %v533_v9  ;;  %v925_v9 = vld [vmem:[%s4616_s5 + $0x50] sm:$0xff] }
  0x9e   : > { %3071 = vset.pattern.permute.xlu1 %v3164_v4  ;;  %v583_v19 = vmul.f32 %v3402_v38, %v538_v10  ;;  %v584_v20 = vmul.f32 %v3404_v39, %v538_v10 }
  0x9f   : > { %702 = vperm.xlu1 %3071, %v454_v34   ;;  %1203 = vmatpush.bf16.msra.mxu0 %v913_v13  ;;  %v693_v28 = vadd.f32 %v3407_v41, %v581_v17  ;;  %v941_v17 = vld [vmem:[%s4616_s5 + $0xd0] sm:$0xff] }
  0xa0   : > { %2970 = vmatpush.bf16.msra.mxu2 %v913_v13  ;;  %1292 = vmatpush.bf16.msra.mxu1 %v914_v14 }
  0xa1   : > { %2978 = vmatpush.bf16.msra.mxu3 %v914_v14  ;;  %3072 = vset.pattern.permute.xlu2 %v3164_v4  ;;  %v694_v4 = vadd.f32 %v3407_v41, %v582_v18 }
  0xa2   : > { %1104 = vperm.xlu0 %3043, %v946_v15   ;;  %706 = vperm.xlu2 %3072, %v455_v49   ;;  %v747_v43 = vpop.permute.xlu2 %746  ;;  %v927_v49 = vld [vmem:[%s4616_s5 + $0x60] sm:$0xff] }
  0xa3   : > { %v793_v57 = vmul.f32 %v3415_v47, %v747_v43  ;;  %v794_v58 = vmul.f32 %v3417_v48, %v747_v43 }
  0xa4   : > { %v657_v23 = vpop.permute.xlu0 %656 }
  0xa5   : > { %v695_v24 = vadd.f32 %v657_v23, %v583_v19  ;;  %v696_v25 = vadd.f32 %v657_v23, %v584_v20  ;;  %v751_v26 = vpop.permute.xlu1 %750  ;;  %v940_v20 = vld [vmem:[%s4616_s5 + $0xc8] sm:$0xff]  ;;  %v942_v23 = vld [vmem:[%s4616_s5 + $0xd8] sm:$0xff] }
  0xa6   : > { %v795_v29 = vmul.f32 %v3415_v47, %v751_v26  ;;  %v796_v30 = vmul.f32 %v3417_v48, %v751_v26 }
  0xa7   : > { %v829_v31 = vadd.f32 %v797_v21, %v695_v24  ;;  %v830_v32 = vadd.f32 %v798_v22, %v696_v25  ;;  %3073 = vset.pattern.permute.xlu1 %v3163_v3 }
  0xa8   : > { %v827_v34 = vadd.f32 %v795_v29, %v693_v28  ;;  %v828_v35 = vadd.f32 %v796_v30, %v694_v4  ;;  %1024 = vperm.xlu1 %3073, %v930_v27   ;;  %v924_v4 = vld [vmem:[%s4616_s5 + $0x48] sm:$0xff] }
  0xa9   : > { %v861_v36 = vmax.f32 %v829_v31, 0.0  ;;  %v862_v37 = vmax.f32 %v830_v32, 0.0 }
  0xaa   : > { %1089 = vperm.xlu0 %3043, %v943_v33   ;;  %v859_v41 = vmax.f32 %v827_v34, 0.0  ;;  %v860_v42 = vmax.f32 %v828_v35, 0.0  ;;  %3074 = vset.pattern.permute.xlu2 %v3163_v3  ;;  %v928_v3 = vld [vmem:[%s4616_s5 + $0x68] sm:$0xff]  ;;  %v937_v33 = vld [vmem:[%s4616_s5 + $0xb0] sm:$0xff] }
  0xab   : > { %1099 = vperm.xlu2 %3074, %v945_v40   ;;  %v632_v62 = vpop.permute.xlu2 %631  ;;  %v939_v40 = vld [vmem:[%s4616_s5 + $0xc0] sm:$0xff] }
  0xac   : > { %v523_v44 = vpop.permute.xlu0 %522  ;;  %v911_v45 = vpack.c.bf16 %v861_v36, %v859_v41  ;;  %v912_v46 = vpack.c.bf16 %v862_v37, %v860_v42 }
  0xad   : > { %v577_v52 = vmul.f32 %v3402_v38, %v523_v44  ;;  %v578_v53 = vmul.f32 %v3404_v39, %v523_v44 }
  0xae   : > { %v528_v50 = vpop.permute.xlu1 %527  ;;  %1204 = vmatpush.bf16.msra.mxu0 %v911_v45  ;;  %2971 = vmatpush.bf16.msra.mxu2 %v911_v45 }
  0xaf   : > { %1293 = vmatpush.bf16.msra.mxu1 %v912_v46  ;;  %2979 = vmatpush.bf16.msra.mxu3 %v912_v46  ;;  %v579_v54 = vmul.f32 %v3402_v38, %v528_v50  ;;  %v580_v55 = vmul.f32 %v3404_v39, %v528_v50  ;;  %v689_v63 = vadd.f32 %v642_v16, %v577_v52  ;;  %v921_v50 = vld [vmem:[%s4616_s5 + $0x30] sm:$0xff] }
  0xb0   : > { %1009 = vperm.xlu1 %3073, %v927_v49   ;;  %v690_v0 = vadd.f32 %v642_v16, %v578_v53 }
  0xb2   : > { %1004 = vperm.xlu0 %3043, %v926_v51  }
  0xb3   : > { %1014 = vperm.xlu2 %3074, %v928_v3  }
  0xb4   : > { %v647_v56 = vpop.permute.xlu0 %646  ;;  %v739_v21 = vpop.permute.xlu2 %738 }
  0xb5   : > { %v691_v59 = vadd.f32 %v647_v56, %v579_v54  ;;  %v692_v60 = vadd.f32 %v647_v56, %v580_v55  ;;  %v789_v31 = vmul.f32 %v3415_v47, %v739_v21  ;;  %v790_v32 = vmul.f32 %v3417_v48, %v739_v21  ;;  %v920_v54 = vld [vmem:[%s4616_s5 + $0x28] sm:$0xff] }
  0xb7   : > { %v743_v1 = vpop.permute.xlu1 %742  ;;  %v825_v5 = vadd.f32 %v793_v57, %v691_v59  ;;  %v826_v6 = vadd.f32 %v794_v58, %v692_v60  ;;  %v922_v57 = vld [vmem:[%s4616_s5 + $0x38] sm:$0xff] }
  0xb8   : > { %v791_v7 = vmul.f32 %v3415_v47, %v743_v1  ;;  %v792_v8 = vmul.f32 %v3417_v48, %v743_v1  ;;  %1094 = vperm.xlu1 %3073, %v944_v61  }
  0xb9   : > { %v857_v14 = vmax.f32 %v825_v5, 0.0  ;;  %v858_v16 = vmax.f32 %v826_v6, 0.0 }
  0xba   : > { %v823_v10 = vadd.f32 %v791_v7, %v689_v63  ;;  %v824_v11 = vadd.f32 %v792_v8, %v690_v0  ;;  %989 = vperm.xlu0 %3043, %v923_v2   ;;  %v938_v63 = vld [vmem:[%s4616_s5 + $0xb8] sm:$0xff]  ;;  %v917_v2 = vld [vmem:[%s4616_s5 + $0x10] sm:$0xff] }
  0xbb   : > { %999 = vperm.xlu2 %3074, %v925_v9   ;;  %v919_v9 = vld [vmem:[%s4616_s5 + $0x20] sm:$0xff] }
  0xbc   : > { %v513_v12 = vpop.permute.xlu0 %512  ;;  %v855_v13 = vmax.f32 %v823_v10, 0.0  ;;  %v856_v15 = vmax.f32 %v824_v11, 0.0 }
  0xbd   : > { %v573_v27 = vmul.f32 %v3402_v38, %v513_v12  ;;  %v574_v28 = vmul.f32 %v3404_v39, %v513_v12  ;;  %v622_v37 = vpop.permute.xlu2 %621 }
  0xbe   : > { %v909_v18 = vpack.c.bf16 %v857_v14, %v855_v13  ;;  %v910_v19 = vpack.c.bf16 %v858_v16, %v856_v15 }
  0xbf   : > { %v685_v34 = vadd.f32 %v632_v62, %v573_v27  ;;  %v686_v35 = vadd.f32 %v632_v62, %v574_v28 }
  0xc0   : > { %1079 = vperm.xlu1 %3073, %v941_v17   ;;  %v518_v22 = vpop.permute.xlu1 %517  ;;  %1205 = vmatpush.bf16.msra.mxu0 %v909_v18 }
  0xc1   : > { %2972 = vmatpush.bf16.msra.mxu2 %v909_v18  ;;  %1294 = vmatpush.bf16.msra.mxu1 %v910_v19  ;;  %v575_v24 = vmul.f32 %v3402_v38, %v518_v22  ;;  %v576_v25 = vmul.f32 %v3404_v39, %v518_v22  ;;  %v934_v22 = vld [vmem:[%s4616_s5 + $0x98] sm:$0xff] }
  0xc2   : > { %2980 = vmatpush.bf16.msra.mxu3 %v910_v19  ;;  %1074 = vperm.xlu0 %3043, %v940_v20   ;;  %v935_v19 = vld [vmem:[%s4616_s5 + $0xa0] sm:$0xff] }
  0xc3   : > { %1084 = vperm.xlu2 %3074, %v942_v23  }
  0xc4   : > { %v637_v26 = vpop.permute.xlu0 %636 }
  0xc5   : > { %v687_v29 = vadd.f32 %v637_v26, %v575_v24  ;;  %v688_v30 = vadd.f32 %v637_v26, %v576_v25 }
  0xc6   : > { %v731_v59 = vpop.permute.xlu2 %730 }
  0xc7   : > { %v821_v41 = vadd.f32 %v789_v31, %v687_v29  ;;  %v822_v42 = vadd.f32 %v790_v32, %v688_v30  ;;  %v785_v7 = vmul.f32 %v3415_v47, %v731_v59  ;;  %v786_v8 = vmul.f32 %v3417_v48, %v731_v59  ;;  %v918_v32 = vld [vmem:[%s4616_s5 + $0x18] sm:$0xff] }
  0xc8   : > { %994 = vperm.xlu1 %3073, %v924_v4   ;;  %v936_v4 = vld [vmem:[%s4616_s5 + $0xa8] sm:$0xff] }
  0xc9   : > { %v735_v36 = vpop.permute.xlu1 %734  ;;  %v853_v3 = vmax.f32 %v821_v41, 0.0  ;;  %v854_v53 = vmax.f32 %v822_v42, 0.0 }
  0xca   : > { %v787_v43 = vmul.f32 %v3415_v47, %v735_v36  ;;  %v788_v44 = vmul.f32 %v3417_v48, %v735_v36  ;;  %1059 = vperm.xlu0 %3043, %v937_v33  }
  0xcb   : > { %1069 = vperm.xlu2 %3074, %v939_v40  }
  0xcc   : > { %v819_v45 = vadd.f32 %v787_v43, %v685_v34  ;;  %v820_v46 = vadd.f32 %v788_v44, %v686_v35  ;;  %v503_v49 = vpop.permute.xlu0 %502  ;;  %v931_v35 = vld [vmem:[%s4616_s5 + $0x80] sm:$0xff]  ;;  %v933_v44 = vld [vmem:[%s4616_s5 + $0x90] sm:$0xff] }
  0xcd   : > { %v569_v0 = vmul.f32 %v3402_v38, %v503_v49  ;;  %v570_v1 = vmul.f32 %v3404_v39, %v503_v49 }
  0xce   : > { %v851_v51 = vmax.f32 %v819_v45, 0.0  ;;  %v852_v52 = vmax.f32 %v820_v46, 0.0 }
  0xcf   : > { %v681_v10 = vadd.f32 %v622_v37, %v569_v0  ;;  %v682_v11 = vadd.f32 %v622_v37, %v570_v1  ;;  %v612_v13 = vpop.permute.xlu2 %611  ;;  %v932_v1 = vld [vmem:[%s4616_s5 + $0x88] sm:$0xff] }
  0xd0   : > { %979 = vperm.xlu1 %3073, %v921_v50   ;;  %v907_v55 = vpack.c.bf16 %v853_v3, %v851_v51  ;;  %v908_v56 = vpack.c.bf16 %v854_v53, %v852_v52  ;;  %v915_v50 = vld [vmem:[%s4616_s5] sm:$0xff] }
  0xd2   : > { %v508_v58 = vpop.permute.xlu1 %507  ;;  %974 = vperm.xlu0 %3043, %v920_v54   ;;  %1206 = vmatpush.bf16.msra.mxu0 %v907_v55 }
  0xd3   : > { %2973 = vmatpush.bf16.msra.mxu2 %v907_v55  ;;  %1295 = vmatpush.bf16.msra.mxu1 %v908_v56  ;;  %v571_v60 = vmul.f32 %v3402_v38, %v508_v58  ;;  %v572_v61 = vmul.f32 %v3404_v39, %v508_v58 }
  0xd4   : > { %2981 = vmatpush.bf16.msra.mxu3 %v908_v56  ;;  %v627_v62 = vpop.permute.xlu0 %626  ;;  %984 = vperm.xlu2 %3074, %v922_v57   ;;  %v1508_v56 = vld [vmem:[%s3568_s29 + $0x78] sm:$0xff] }
  0xd5   : > { %v683_v5 = vadd.f32 %v627_v62, %v571_v60  ;;  %v684_v6 = vadd.f32 %v627_v62, %v572_v61 }
  0xd7   : > { %v817_v14 = vadd.f32 %v785_v7, %v683_v5  ;;  %v818_v15 = vadd.f32 %v786_v8, %v684_v6  ;;  %v1503_v7 = vld [vmem:[%s3568_s29 + $0x50] sm:$0xff] }
  0xd8   : > { %1064 = vperm.xlu1 %3073, %v938_v63   ;;  %v723_v31 = vpop.permute.xlu2 %722 }
  0xd9   : > { %v849_v24 = vmax.f32 %v817_v14, 0.0  ;;  %v850_v26 = vmax.f32 %v818_v15, 0.0  ;;  %v781_v42 = vmul.f32 %v3415_v47, %v723_v31  ;;  %v782_v43 = vmul.f32 %v3417_v48, %v723_v31 }
  0xda   : > { %959 = vperm.xlu0 %3043, %v917_v2   ;;  %v916_v2 = vld [vmem:[%s4616_s5 + $0x8] sm:$0xff] }
  0xdb   : > { %v727_v12 = vpop.permute.xlu1 %726 }
  0xdc   : > { %v783_v16 = vmul.f32 %v3415_v47, %v727_v12  ;;  %v784_v17 = vmul.f32 %v3417_v48, %v727_v12  ;;  %v493_v18 = vpop.permute.xlu0 %492  ;;  %969 = vperm.xlu2 %3074, %v919_v9  }
  0xdd   : > { %v565_v36 = vmul.f32 %v3402_v38, %v493_v18  ;;  %v566_v37 = vmul.f32 %v3404_v39, %v493_v18  ;;  %v1507_v18 = vld [vmem:[%s3568_s29 + $0x70] sm:$0xff] }
  0xde   : > { %v815_v20 = vadd.f32 %v783_v16, %v681_v10  ;;  %v816_v21 = vadd.f32 %v784_v17, %v682_v11  ;;  %v1505_v17 = vld [vmem:[%s3568_s29 + $0x60] sm:$0xff] }
  0xdf   : > { %v677_v45 = vadd.f32 %v612_v13, %v565_v36  ;;  %v678_v46 = vadd.f32 %v612_v13, %v566_v37  ;;  %v1497_v37 = vld [vmem:[%s3568_s29 + $0x20] sm:$0xff] }
  0xe0   : > { %1049 = vperm.xlu1 %3073, %v935_v19   ;;  %v847_v23 = vmax.f32 %v815_v20, 0.0  ;;  %v848_v25 = vmax.f32 %v816_v21, 0.0 }
  0xe1   : > { %v602_v55 = vpop.permute.xlu2 %601 }
  0xe2   : > { %1044 = vperm.xlu0 %3043, %v934_v22   ;;  %v905_v27 = vpack.c.bf16 %v849_v24, %v847_v23  ;;  %v906_v28 = vpack.c.bf16 %v850_v26, %v848_v25  ;;  %v1502_v23 = vld [vmem:[%s3568_s29 + $0x48] sm:$0xff] }
  0xe4   : > { %v498_v29 = vpop.permute.xlu1 %497  ;;  %1207 = vmatpush.bf16.msra.mxu0 %v905_v27  ;;  %2974 = vmatpush.bf16.msra.mxu2 %v905_v27  ;;  %v617_v30 = vpop.permute.xlu0 %616 }
  0xe5   : > { %1296 = vmatpush.bf16.msra.mxu1 %v906_v28  ;;  %2982 = vmatpush.bf16.msra.mxu3 %v906_v28  ;;  %v567_v33 = vmul.f32 %v3402_v38, %v498_v29  ;;  %v568_v34 = vmul.f32 %v3404_v39, %v498_v29 }
  0xe6   : > { %1054 = vperm.xlu2 %3074, %v936_v4  }
  0xe7   : > { %v679_v40 = vadd.f32 %v617_v30, %v567_v33  ;;  %v680_v41 = vadd.f32 %v617_v30, %v568_v34  ;;  %v1504_v34 = vld [vmem:[%s3568_s29 + $0x58] sm:$0xff] }
  0xe8   : > { %964 = vperm.xlu1 %3073, %v918_v32  }
  0xe9   : > { %v813_v51 = vadd.f32 %v781_v42, %v679_v40  ;;  %v814_v3 = vadd.f32 %v782_v43, %v680_v41  ;;  %v1506_v41 = vld [vmem:[%s3568_s29 + $0x68] sm:$0xff] }
  0xea   : > { %1029 = vperm.xlu0 %3043, %v931_v35   ;;  %v715_v10 = vpop.permute.xlu2 %714 }
  0xeb   : > { %v845_v60 = vmax.f32 %v813_v51, 0.0  ;;  %v846_v62 = vmax.f32 %v814_v3, 0.0  ;;  %v777_v14 = vmul.f32 %v3415_v47, %v715_v10  ;;  %v778_v16 = vmul.f32 %v3417_v48, %v715_v10  ;;  %v1493_v10 = vld [vmem:[%s3568_s29] sm:$0xff] }
  0xec   : > { %v483_v54 = vpop.permute.xlu0 %482 }
  0xed   : > { %v719_v49 = vpop.permute.xlu1 %718  ;;  %v561_v11 = vmul.f32 %v3402_v38, %v483_v54  ;;  %v562_v12 = vmul.f32 %v3404_v39, %v483_v54  ;;  %v1496_v54 = vld [vmem:[%s3568_s29 + $0x18] sm:$0xff] }
  0xee   : > { %v779_v52 = vmul.f32 %v3415_v47, %v719_v49  ;;  %v780_v53 = vmul.f32 %v3417_v48, %v719_v49  ;;  %1039 = vperm.xlu2 %3074, %v933_v44  }
  0xef   : > { %v673_v19 = vadd.f32 %v602_v55, %v561_v11  ;;  %v674_v20 = vadd.f32 %v602_v55, %v562_v12  ;;  %v1501_v55 = vld [vmem:[%s3568_s29 + $0x40] sm:$0xff]  ;;  %v1958_v11 = vld [vmem:[%s4619_s8 + $0x68] sm:$0xff]  ;;  %v1495_v12 = vld [vmem:[%s3568_s29 + $0x10] sm:$0xff] }
  0xf0   : > { %v811_v57 = vadd.f32 %v779_v52, %v677_v45  ;;  %v812_v58 = vadd.f32 %v780_v53, %v678_v46  ;;  %949 = vperm.xlu1 %3073, %v915_v50   ;;  %v1499_v50 = vld [vmem:[%s3568_s29 + $0x30] sm:$0xff] }
  0xf2   : > { %1586 = vperm.xlu0 %3043, %v1508_v56   ;;  %v843_v59 = vmax.f32 %v811_v57, 0.0  ;;  %v844_v61 = vmax.f32 %v812_v58, 0.0 }
  0xf3   : > { %v592_v29 = vpop.permute.xlu2 %591 }
  0xf4   : > { %v903_v63 = vpack.c.bf16 %v845_v60, %v843_v59  ;;  %v904_v0 = vpack.c.bf16 %v846_v62, %v844_v61  ;;  %v607_v9 = vpop.permute.xlu0 %606 }
  0xf6   : > { %v488_v5 = vpop.permute.xlu1 %487  ;;  %1208 = vmatpush.bf16.msra.mxu0 %v903_v63  ;;  %2975 = vmatpush.bf16.msra.mxu2 %v903_v63  ;;  %v1498_v63 = vld [vmem:[%s3568_s29 + $0x28] sm:$0xff] }
  0xf7   : > { %v563_v6 = vmul.f32 %v3402_v38, %v488_v5  ;;  %1297 = vmatpush.bf16.msra.mxu1 %v904_v0  ;;  %2983 = vmatpush.bf16.msra.mxu3 %v904_v0  ;;  %v564_v8 = vmul.f32 %v3404_v39, %v488_v5 }
  0xf8   : > { %1034 = vperm.xlu1 %3073, %v932_v1   ;;  %954 = vperm.xlu2 %3074, %v916_v2  }
  0xf9   : > { %v675_v13 = vadd.f32 %v607_v9, %v563_v6  ;;  %v676_v15 = vadd.f32 %v607_v9, %v564_v8  ;;  %v1960_v6 = vld [vmem:[%s4619_s8 + $0x78] sm:$0xff]  ;;  %v2932_v9 = vld [vmem:[%s4615_s4 + $0x50] sm:$0xff] }
  0xfa   : > { %1561 = vperm.xlu0 %3043, %v1503_v7   ;;  %v1500_v8 = vld [vmem:[%s3568_s29 + $0x38] sm:$0xff] }
  0xfb   : > { %v809_v21 = vadd.f32 %v777_v14, %v675_v13  ;;  %v810_v24 = vadd.f32 %v778_v16, %v676_v15  ;;  %v1959_v13 = vld [vmem:[%s4619_s8 + $0x70] sm:$0xff]  ;;  %v1974_v14 = vld [vmem:[%s4619_s8 + $0xe8] sm:$0xff] }
  0xfc   : > { %v473_v4 = vpop.permute.xlu0 %472  ;;  %v707_v44 = vpop.permute.xlu2 %706  ;;  %v2923_v15 = vld [vmem:[%s4615_s4 + $0x8] sm:$0xff] }
  0xfd   : > { %v841_v31 = vmax.f32 %v809_v21, 0.0  ;;  %v842_v33 = vmax.f32 %v810_v24, 0.0  ;;  %v557_v45 = vmul.f32 %v3402_v38, %v473_v4  ;;  %v558_v46 = vmul.f32 %v3404_v39, %v473_v4  ;;  %v1494_v16 = vld [vmem:[%s3568_s29 + $0x8] sm:$0xff]  ;;  %v1956_v21 = vld [vmem:[%s4619_s8 + $0x58] sm:$0xff]  ;;  %v1957_v24 = vld [vmem:[%s4619_s8 + $0x60] sm:$0xff]  ;;  %s2917_s29 = sshll.u32 %s3153_s22, 1 }
  0xfe   : > { %v773_v52 = vmul.f32 %v3415_v47, %v707_v44  ;;  %v774_v53 = vmul.f32 %v3417_v48, %v707_v44  ;;  %v1953_v4 = vld [vmem:[%s4619_s8 + $0x40] sm:$0xff]  ;;  %v1946_v44 = vld [vmem:[%s4619_s8 + $0x8] sm:$0xff]  ;;  %s2622_s25 = scalar_lea.hbm %s4622_s11, %s2917_s29  ;;  %s2624_s22 = sshll.u32 %s421_s27, 4  ;;  %s2625_s22 = int_to_ptr.vmem [resolvable:$true] %s2624_s22 }
  0xff   : > { %v711_v22 = vpop.permute.xlu1 %710  ;;  %v669_v56 = vadd.f32 %v592_v29, %v557_v45  ;;  %v670_v57 = vadd.f32 %v592_v29, %v558_v46  ;;  %v1968_v29 = vld [vmem:[%s4619_s8 + $0xb8] sm:$0xff]  ;;  %v1967_v45 = vld [vmem:[%s4619_s8 + $0xb0] sm:$0xff]  ;;  %s2626_s13 = sshll.u32 %s2622_s25, 4  ;;  %s2627_s13 = int_to_ptr.hbm [resolvable:$true] %s2626_s13 }
 0x100   : > { %v775_v25 = vmul.f32 %v3415_v47, %v711_v22  ;;  %v776_v26 = vmul.f32 %v3417_v48, %v711_v22  ;;  %1571 = vperm.xlu1 %3073, %v1505_v17   ;;  %1581 = vperm.xlu2 %3074, %v1507_v18   ;;  %v2933_v17 = vld [vmem:[%s4615_s4 + $0x58] sm:$0xff]  ;;  %v1975_v18 = vld [vmem:[%s4619_s8 + $0xf0] sm:$0xff]  ;;  %s3097_s15 = sshra.s32 %s2627_s13, 4  ;;  %s3098_s15 = int_to_ptr.hbm [resolvable:$true] %s3097_s15 }
 0x101   : > { %v1971_v22 = vld [vmem:[%s4619_s8 + $0xd0] sm:$0xff]  ;;  %s3099_s26 = scalar_lea.hbm %s3098_s15, 2  ;;  %p3104_p1 = scmp.lt.s32.totalorder %s3098_s15, %s4622_s11 }
 0x102   : > { %v807_v27 = vadd.f32 %v775_v25, %v673_v19  ;;  %v808_v28 = vadd.f32 %v776_v26, %v674_v20  ;;  %1556 = vperm.xlu0 %3043, %v1502_v23   ;;  %v1955_v19 = vld [vmem:[%s4619_s8 + $0x50] sm:$0xff]  ;;  %v1976_v20 = vld [vmem:[%s4619_s8 + $0xf8] sm:$0xff]  ;;  %v2934_v25 = vld [vmem:[%s4615_s4 + $0x60] sm:$0xff]  ;;  %p3100_p12 = scmp.ne.s32.totalorder %s3098_s15, %s3099_s26  ;;  %p3105_p2 = scmp.lt.s32.totalorder %s3103_s18, %s3099_s26 }
 0x103   : > { %v2924_v23 = vld [vmem:[%s4615_s4 + $0x10] sm:$0xff]  ;;  %v1972_v26 = vld [vmem:[%s4619_s8 + $0xd8] sm:$0xff] }
 0x104   : > { %v839_v30 = vmax.f32 %v807_v27, 0.0  ;;  %v840_v32 = vmax.f32 %v808_v28, 0.0  ;;  %v597_v49 = vpop.permute.xlu0 %596  ;;  %v1952_v27 = vld [vmem:[%s4619_s8 + $0x38] sm:$0xff]  ;;  %v1973_v28 = vld [vmem:[%s4619_s8 + $0xe0] sm:$0xff]  ;;  %v1947_v46 = vld [vmem:[%s4619_s8 + $0x10] sm:$0xff]  ;;  %p3101_p13 = pnand %p3100_p12, %p3268_p4  ;;  %p3106_p3 = por %p3105_p2, %p3104_p1 }
 0x106   : > { %v901_v35 = vpack.c.bf16 %v841_v31, %v839_v30  ;;  %v902_v36 = vpack.c.bf16 %v842_v33, %v840_v32  ;;  %v2925_v30 = vld [vmem:[%s4615_s4 + $0x18] sm:$0xff]  ;;  %v1954_v31 = vld [vmem:[%s4619_s8 + $0x48] sm:$0xff]  ;;  %v1969_v33 = vld [vmem:[%s4619_s8 + $0xc0] sm:$0xff]  ;;  %p3102_p0 = pneg %p3101_p13 }
 0x107   : > { %v2935_v32 = vld [vmem:[%s4615_s4 + $0x68] sm:$0xff] }
 0x108   : > { %v478_v40 = vpop.permute.xlu1 %477  ;;  %1566 = vperm.xlu1 %3073, %v1504_v34   ;;  %1209 = vmatpush.bf16.msra.mxu0 %v901_v35  ;;  %v1949_v34 = vld [vmem:[%s4619_s8 + $0x20] sm:$0xff]  ;;  %p3107_p5 = pnand %p3106_p3, %p3102_p0 }
 0x109   : > { %2976 = vmatpush.bf16.msra.mxu2 %v901_v35  ;;  %1298 = vmatpush.bf16.msra.mxu1 %v902_v36  ;;  %v559_v42 = vmul.f32 %v3402_v38, %v478_v40  ;;  %v560_v43 = vmul.f32 %v3404_v39, %v478_v40  ;;  %v1970_v35 = vld [vmem:[%s4619_s8 + $0xc8] sm:$0xff]  ;;  %v2926_v40 = vld [vmem:[%s4615_s4 + $0x20] sm:$0xff] }
 0x10a   : > { %2984 = vmatpush.bf16.msra.mxu3 %v902_v36  ;;  %1531 = vperm.xlu0 %3043, %v1497_v37   ;;  %v1950_v36 = vld [vmem:[%s4619_s8 + $0x28] sm:$0xff]  ;;  %v1965_v37 = vld [vmem:[%s4619_s8 + $0xa0] sm:$0xff] }
 0x10b   : > { %1576 = vperm.xlu2 %3074, %v1506_v41   ;;  %v671_v51 = vadd.f32 %v597_v49, %v559_v42  ;;  %v672_v3 = vadd.f32 %v597_v49, %v560_v43  ;;  %v1951_v41 = vld [vmem:[%s4619_s8 + $0x30] sm:$0xff]  ;;  %v1966_v43 = vld [vmem:[%s4619_s8 + $0xa8] sm:$0xff] }
 0x10c   : > { %v2936_v42 = vld [vmem:[%s4615_s4 + $0x70] sm:$0xff]  ;;  %v1962_v49 = vld [vmem:[%s4619_s8 + $0x88] sm:$0xff] }
 0x10d   : > { %v805_v59 = vadd.f32 %v773_v52, %v671_v51  ;;  %v806_v60 = vadd.f32 %v774_v53, %v672_v3  ;;  %v1948_v51 = vld [vmem:[%s4619_s8 + $0x18] sm:$0xff]  ;;  %v1963_v52 = vld [vmem:[%s4619_s8 + $0x90] sm:$0xff] }
 0x10e   : > { %v2937_v3 = vld [vmem:[%s4615_s4 + $0x78] sm:$0xff] }
 0x10f   : > { %v837_v1 = vmax.f32 %v805_v59, 0.0  ;;  %v838_v5 = vmax.f32 %v806_v60, 0.0  ;;  %v1964_v53 = vld [vmem:[%s4619_s8 + $0x98] sm:$0xff]  ;;  %v2476_v59 = vld [vmem:[#allocation2] sm:$0x1] }
 0x110   : > { %1541 = vperm.xlu1 %3073, %v1499_v50   ;;  %v2927_v50 = vld [vmem:[%s4615_s4 + $0x28] sm:$0xff] }
 0x111   : > { %v703_v58 = vpop.permute.xlu1 %702 }
 0x112   : > { %v771_v38 = vmul.f32 %v3415_v47, %v703_v58  ;;  %v772_v39 = vmul.f32 %v3417_v48, %v703_v58  ;;  %1526 = vperm.xlu0 %3043, %v1496_v54   ;;  %v2922_v48 = vld [vmem:[%s4615_s4] sm:$0xff] }
 0x113   : > { %1551 = vperm.xlu2 %3074, %v1501_v55   ;;  %v1961_v54 = vld [vmem:[%s4619_s8 + $0x80] sm:$0xff]  ;;  %v2928_v55 = vld [vmem:[%s4615_s4 + $0x30] sm:$0xff] }
 0x114   : > { %v803_v61 = vadd.f32 %v771_v38, %v669_v56  ;;  %v804_v62 = vadd.f32 %v772_v39, %v670_v57  ;;  %v1945_v56 = vld [vmem:[%s4619_s8] sm:$0xff]  ;;  %v3748_v57 = vpop.permute.xlu0 %1019  ;;  %v2929_v39 = vld [vmem:[%s4615_s4 + $0x38] sm:$0xff] }
 0x116   : > { %v835_v0 = vmax.f32 %v803_v61, 0.0  ;;  %v836_v2 = vmax.f32 %v804_v62, 0.0 }
 0x118   : > { %1536 = vperm.xlu1 %3073, %v1498_v63   ;;  %v899_v7 = vpack.c.bf16 %v837_v1, %v835_v0  ;;  %v900_v47 = vpack.c.bf16 %v838_v5, %v836_v2  ;;  %v2930_v63 = vld [vmem:[%s4615_s4 + $0x40] sm:$0xff] }
 0x11a   : > { %2054 = vperm.xlu0 %3043, %v1960_v6   ;;  %1210 = vmatpush.bf16.msra.mxu0 %v899_v7  ;;  %v3750_v58 = vpop.permute.xlu1 %1024  ;;  %v3774_v6 = vpop.permute.xlu2 %1099 }
 0x11b   : > { %2977 = vmatpush.bf16.msra.mxu2 %v899_v7  ;;  %1299 = vmatpush.bf16.msra.mxu1 %v900_v47 }
 0x11c   : > { %2985 = vmatpush.bf16.msra.mxu3 %v900_v47  ;;  %1546 = vperm.xlu2 %3074, %v1500_v8   ;;  %v3752_v60 = vpop.permute.xlu0 %1104 }
 0x11d   : > { %1211 = vmatmul.bf16.vlgmr.msra.gmra.mxu0 %v2922_v48 }
 0x11e   : > { %1261 = vmatmul.bf16.vlgmr.msra.gmra.mxu2 %v2932_v9  ;;  %1300 = vmatmul.bf16.vlgmr.msra.gmra.mxu1 %v2922_v48 }
 0x11f   : > { %1350 = vmatmul.bf16.vlgmr.msra.gmra.mxu3 %v2932_v9 }
 0x120   : > { %1511 = vperm.xlu1 %3073, %v1493_v10  }
 0x122   : > { %2044 = vperm.xlu0 %3043, %v1958_v11   ;;  %v3754_v38 = vpop.permute.xlu1 %1009  ;;  %v3788_v11 = vpop.permute.xlu2 %1014 }
 0x124   : > { %1521 = vperm.xlu2 %3074, %v1495_v12   ;;  %v3759_v61 = vpop.permute.xlu0 %1089 }
 0x128   : > { %2049 = vperm.xlu1 %3073, %v1959_v13   ;;  %v2931_v13 = vld [vmem:[%s4615_s4 + $0x48] sm:$0xff] }
 0x12a   : > { %2124 = vperm.xlu0 %3043, %v1974_v14   ;;  %v3761_v62 = vpop.permute.xlu1 %1094 }
 0x12c   : > { %1516 = vperm.xlu2 %3074, %v1494_v16   ;;  %v3766_v0 = vpop.permute.xlu0 %1004 }
 0x12d   : > { %1216 = vmatmul.bf16.gmra.mxu0 %v2923_v15 }
 0x12e   : > { %1266 = vmatmul.bf16.gmra.mxu2 %v2933_v17  ;;  %1305 = vmatmul.bf16.gmra.mxu1 %v2923_v15 }
 0x12f   : > { %1355 = vmatmul.bf16.gmra.mxu3 %v2933_v17 }
 0x130   : > { %2129 = vperm.xlu1 %3073, %v1975_v18  }
 0x132   : > { %2029 = vperm.xlu0 %3043, %v1955_v19   ;;  %v3772_v5 = vpop.permute.xlu1 %1079 }
 0x134   : > { %2134 = vperm.xlu2 %3074, %v1976_v20   ;;  %v3784_v9 = vpop.permute.xlu0 %989  ;;  %v3807_v20 = vpop.permute.xlu2 %999 }
 0x138   : > { %2034 = vperm.xlu1 %3073, %v1956_v21  }
 0x13a   : > { %2109 = vperm.xlu0 %3043, %v1971_v22   ;;  %v3786_v10 = vpop.permute.xlu1 %994 }
 0x13c   : > { %2039 = vperm.xlu2 %3074, %v1957_v24   ;;  %v3801_v17 = vpop.permute.xlu0 %1074 }
 0x13d   : > { %1221 = vmatmul.bf16.gmra.mxu0 %v2924_v23 }
 0x13e   : > { %1271 = vmatmul.bf16.gmra.mxu2 %v2934_v25  ;;  %1310 = vmatmul.bf16.gmra.mxu1 %v2924_v23 }
 0x13f   : > { %1360 = vmatmul.bf16.gmra.mxu3 %v2934_v25 }
 0x140   : > { %2114 = vperm.xlu1 %3073, %v1972_v26  }
 0x142   : > { %2014 = vperm.xlu0 %3043, %v1952_v27   ;;  %v3803_v18 = vpop.permute.xlu1 %979 }
 0x144   : > { %2119 = vperm.xlu2 %3074, %v1973_v28   ;;  %v3813_v24 = vpop.permute.xlu0 %1059 }
 0x148   : > { %2019 = vperm.xlu1 %3073, %v1953_v4  }
 0x14a   : > { %2094 = vperm.xlu0 %3043, %v1968_v29   ;;  %v3818_v27 = vpop.permute.xlu1 %1064 }
 0x14c   : > { %2024 = vperm.xlu2 %3074, %v1954_v31   ;;  %v3825_v31 = vpop.permute.xlu2 %1084 }
 0x14d   : > { %1226 = vmatmul.bf16.gmra.mxu0 %v2925_v30 }
 0x14e   : > { %1276 = vmatmul.bf16.gmra.mxu2 %v2935_v32  ;;  %1315 = vmatmul.bf16.gmra.mxu1 %v2925_v30 }
 0x14f   : > { %1365 = vmatmul.bf16.gmra.mxu3 %v2935_v32 }
 0x150   : > { %2099 = vperm.xlu1 %3073, %v1969_v33  }
 0x152   : > { %1999 = vperm.xlu0 %3043, %v1949_v34  }
 0x154   : > { %2104 = vperm.xlu2 %3074, %v1970_v35  }
 0x158   : > { %2004 = vperm.xlu1 %3073, %v1950_v36  }
 0x15a   : > { %2079 = vperm.xlu0 %3043, %v1965_v37  }
 0x15c   : > { %2009 = vperm.xlu2 %3074, %v1951_v41   ;;  %v1070_v41 = vpop.permute.xlu2 %1069 }
 0x15d   : > { %1231 = vmatmul.bf16.gmra.mxu0 %v2926_v40 }
 0x15e   : > { %1281 = vmatmul.bf16.gmra.mxu2 %v2936_v42  ;;  %1320 = vmatmul.bf16.gmra.mxu1 %v2926_v40 }
 0x15f   : > { %1370 = vmatmul.bf16.gmra.mxu3 %v2936_v42 }
 0x160   : > { %2084 = vperm.xlu1 %3073, %v1966_v43  }
 0x162   : > { %1984 = vperm.xlu0 %3043, %v1946_v44  }
 0x164   : > { %2089 = vperm.xlu2 %3074, %v1967_v45  }
 0x168   : > { %1989 = vperm.xlu1 %3073, %v1947_v46  }
 0x16a   : > { %2064 = vperm.xlu0 %3043, %v1962_v49  }
 0x16c   : > { %1994 = vperm.xlu2 %3074, %v1948_v51  }
 0x16d   : > { %1236 = vmatmul.bf16.gmra.mxu0 %v2927_v50 }
 0x16e   : > { %1286 = vmatmul.bf16.gmra.mxu2 %v2937_v3  ;;  %1325 = vmatmul.bf16.gmra.mxu1 %v2927_v50 }
 0x16f   : > { %1375 = vmatmul.bf16.gmra.mxu3 %v2937_v3 }
 0x170   : > { %2069 = vperm.xlu1 %3073, %v1963_v52  }
 0x174   : > { %2074 = vperm.xlu2 %3074, %v1964_v53  }
 0x178   : > { %2059 = vperm.xlu1 %3073, %v1961_v54   ;;  %v3839_v54 = vpop.permute.xlu2 %984 }
 0x17c   : > { %1979 = vperm.xlu2 %3074, %v1945_v56  }
 0x17d   : > { %1241 = vmatmul.bf16.gmra.mxu0 %v2928_v55 }
 0x17e   : > { %1330 = vmatmul.bf16.gmra.mxu1 %v2928_v55 }
 0x184   : > { %2479 = vperm.xlu2 %3074, %v2476_v59  }
 0x18d   : > { %1246 = vmatmul.bf16.gmra.mxu0 %v2929_v39 }
 0x18e   : > { %1335 = vmatmul.bf16.gmra.mxu1 %v2929_v39 }
 0x19a   : > { %v3768_v1 = vpop.f32.mrf.mxu0 }
 0x19b   : > { %v3770_v2 = vpop.f32.mrf.mxu1 }
 0x19c   : > { %4633 = vst [vmem:[#allocation7_spill] sm:$0xff] %v3770_v2  ;;  %v3866_v2 = vpop.permute.xlu2 %969 }
 0x19d   : > { %1251 = vmatmul.bf16.gmra.mxu0 %v2930_v63 }
 0x19e   : > { %1340 = vmatmul.bf16.gmra.mxu1 %v2930_v63 }
 0x1a1   : > { %v3776_v7 = vpop.f32.mrf.mxu2 }
 0x1a2   : > { %v3778_v47 = vpop.f32.mrf.mxu3  ;;  %v3780_v48 = vpop.f32.mrf.mxu0 }
 0x1a3   : > { %4634 = vst [vmem:[#allocation8_spill] sm:$0xff] %v3778_v47  ;;  %v3782_v8 = vpop.f32.mrf.mxu1 }
 0x1a4   : > { %4635 = vst [vmem:[#allocation9_spill] sm:$0xff] %v3782_v8 }
 0x1a9   : > { %v3790_v12 = vpop.f32.mrf.mxu2 }
 0x1aa   : > { %v3795_v14 = vpop.f32.mrf.mxu3  ;;  %v3797_v15 = vpop.f32.mrf.mxu0 }
 0x1ab   : > { %4636 = vst [vmem:[#allocation10_spill] sm:$0xff] %v3795_v14  ;;  %v3799_v16 = vpop.f32.mrf.mxu1 }
 0x1ac   : > { %4637 = vst [vmem:[#allocation11_spill] sm:$0xff] %v3799_v16 }
 0x1ad   : > { %1256 = vmatmul.bf16.gmra.mxu0 %v2931_v13 }
 0x1ae   : > { %1345 = vmatmul.bf16.gmra.mxu1 %v2931_v13 }
 0x1b1   : > { %v3805_v19 = vpop.f32.mrf.mxu2 }
 0x1b2   : > { %v1356_v21 = vpop.f32.mrf.mxu3  ;;  %v3809_v22 = vpop.f32.mrf.mxu0 }
 0x1b3   : > { %v3811_v23 = vpop.f32.mrf.mxu1  ;;  %v1357_v25 = vadd.f32 %v1356_v21, %v3813_v24 }
 0x1b4   : > { %4638 = vst [vmem:[#allocation12_spill] sm:$0xff] %v3811_v23 }
 0x1b5   : > { %v1426_v32 = vmax.f32 %v1357_v25, 0.0 }
 0x1b9   : > { %v3816_v26 = vpop.f32.mrf.mxu2 }
 0x1ba   : > { %v1358_v28 = vpop.f32.mrf.mxu3  ;;  %v3821_v29 = vpop.f32.mrf.mxu0 }
 0x1bb   : > { %v1359_v4 = vadd.f32 %v1358_v28, %v3818_v27  ;;  %v3823_v30 = vpop.f32.mrf.mxu1 }
 0x1bd   : > { %v1428_v33 = vmax.f32 %v1359_v4, 0.0 }
 0x1bf   : > { %v3827_v34 = vpack.c.bf16 %v1428_v33, %v1426_v32 }
 0x1c1   : > { %4639 = vst [vmem:[#allocation13_spill] sm:$0xff] %v3827_v34  ;;  %v1272_v35 = vpop.f32.mrf.mxu2 }
 0x1c2   : > { %v1361_v36 = vpop.f32.mrf.mxu3  ;;  %v3829_v37 = vpop.f32.mrf.mxu0 }
 0x1c3   : > { %v3831_v40 = vpop.f32.mrf.mxu1  ;;  %v1362_v42 = vadd.f32 %v1361_v36, %v1070_v41 }
 0x1c5   : > { %v1430_v45 = vmax.f32 %v1362_v42, 0.0 }
 0x1c9   : > { %v1274_v43 = vpop.f32.mrf.mxu2 }
 0x1ca   : > { %v1363_v44 = vpop.f32.mrf.mxu3  ;;  %v3834_v49 = vpop.f32.mrf.mxu0 }
 0x1cb   : > { %v1364_v46 = vadd.f32 %v1363_v44, %v3801_v17  ;;  %v1316_v50 = vpop.f32.mrf.mxu1 }
 0x1cc   : > { %v1317_v51 = vadd.f32 %v1316_v50, %v3803_v18 }
 0x1cd   : > { %v1432_v3 = vmax.f32 %v1364_v46, 0.0 }
 0x1ce   : > { %v1394_v59 = vmax.f32 %v1317_v51, 0.0 }
 0x1cf   : > { %v3837_v52 = vpack.c.bf16 %v1432_v3, %v1430_v45 }
 0x1d1   : > { %4640 = vst [vmem:[#allocation14_spill] sm:$0xff] %v3837_v52  ;;  %v1277_v53 = vpop.f32.mrf.mxu2 }
 0x1d2   : > { %v3841_v55 = vpop.f32.mrf.mxu0  ;;  %v1278_v52 = vadd.f32 %v1277_v53, %v3772_v5  ;;  %v1270_v53 = vadd.f32 %v3816_v26, %v3818_v27 }
 0x1d3   : > { %v1318_v56 = vpop.f32.mrf.mxu1 }
 0x1d4   : > { %v1319_v39 = vadd.f32 %v1318_v56, %v3839_v54  ;;  %v1433_v16 = vmax.f32 %v1278_v52, 0.0 }
 0x1d6   : > { %v1396_v63 = vmax.f32 %v1319_v39, 0.0 }
 0x1d8   : > { %v3844_v13 = vpack.c.bf16 %v1396_v63, %v1394_v59 }
 0x1d9   : > { %v1279_v21 = vpop.f32.mrf.mxu2 }
 0x1da   : > { %4641 = vst [vmem:[#allocation15_spill] sm:$0xff] %v3844_v13  ;;  %v3846_v25 = vpop.f32.mrf.mxu0  ;;  %v1280_v14 = vadd.f32 %v1279_v21, %v3825_v31  ;;  %v1273_v13 = vadd.f32 %v1272_v35, %v1070_v41  ;;  %v1427_v35 = vmax.f32 %v1270_v53, 0.0 }
 0x1db   : > { %v1321_v28 = vpop.f32.mrf.mxu1 }
 0x1dc   : > { %v1322_v4 = vadd.f32 %v1321_v28, %v3784_v9  ;;  %v1435_v23 = vmax.f32 %v1280_v14, 0.0  ;;  %v1429_v21 = vmax.f32 %v1273_v13, 0.0 }
 0x1de   : > { %v1398_v44 = vmax.f32 %v1322_v4, 0.0 }
 0x1e1   : > { %v1282_v32 = vpop.f32.mrf.mxu2 }
 0x1e2   : > { %v3849_v33 = vpop.f32.mrf.mxu0 }
 0x1e3   : > { %v1323_v36 = vpop.f32.mrf.mxu1 }
 0x1e4   : > { %v1324_v42 = vadd.f32 %v1323_v36, %v3786_v10 }
 0x1e6   : > { %v1400_v45 = vmax.f32 %v1324_v42, 0.0  ;;  %v1283_v42 = vadd.f32 %v1282_v32, %v3759_v61 }
 0x1e8   : > { %v3852_v46 = vpack.c.bf16 %v1400_v45, %v1398_v44 }
 0x1e9   : > { %v1284_v50 = vpop.f32.mrf.mxu2 }
 0x1ea   : > { %v3854_v51 = vpop.f32.mrf.mxu0  ;;  %v1285_v28 = vadd.f32 %v1284_v50, %v3761_v62  ;;  %v1437_v50 = vmax.f32 %v1283_v42, 0.0  ;;  %v1268_v42 = vadd.f32 %v3805_v19, %v3813_v24 }
 0x1eb   : > { %v3856_v3 = vpop.f32.mrf.mxu1 }
 0x1ec   : > { %v1439_v8 = vmax.f32 %v1285_v28, 0.0 }
 0x1ee   : > { %v1489_v32 = vpack.c.bf16 %v1439_v8, %v1437_v50 }
 0x1f1   : > { %v1287_v56 = vpop.f32.mrf.mxu2 }
 0x1f2   : > { %v1239_v59 = vpop.f32.mrf.mxu0  ;;  %v1288_v39 = vadd.f32 %v1287_v56, %v3774_v6  ;;  %v3868_v56 = vpop.f32.mrf.mxu3 }
 0x1f3   : > { %v3860_v34 = vpop.f32.mrf.mxu1 }
 0x1f4   : > { %v1441_v44 = vmax.f32 %v1288_v39, 0.0 }
 0x1f9   : > { %v1289_v63 = vpop.f32.mrf.mxu2 }
 0x1fa   : > { %v1290_v36 = vadd.f32 %v1289_v63, %v3752_v60  ;;  %v1242_v4 = vpop.f32.mrf.mxu0  ;;  %v1275_v63 = vadd.f32 %v1274_v43, %v3801_v17  ;;  %v3879_v17 = vpop.permute.xlu2 %1054 }
 0x1fb   : > { %v1265_v14 = vadd.f32 %v3790_v12, %v3879_v17  ;;  %v3885_v41 = vpop.f32.mrf.mxu3 }
 0x1fc   : > { %v1443_v45 = vmax.f32 %v1290_v36, 0.0  ;;  %v3871_v36 = vpop.f32.mrf.mxu1  ;;  %v1431_v28 = vmax.f32 %v1275_v63, 0.0  ;;  %v1243_v63 = vadd.f32 %v1242_v4, %v3754_v38 }
 0x1fd   : > { %v1423_v19 = vmax.f32 %v1265_v14, 0.0  ;;  %v1238_v14 = vadd.f32 %v3854_v51, %v3807_v20  ;;  %v1230_v51 = vadd.f32 %v3841_v55, %v3839_v54 }
 0x1fe   : > { %v1491_v47 = vpack.c.bf16 %v1443_v45, %v1441_v44  ;;  %v1487_v44 = vpack.c.bf16 %v1435_v23, %v1433_v16  ;;  %v1485_v26 = vpack.c.bf16 %v1431_v28, %v1429_v21  ;;  %v1425_v16 = vmax.f32 %v1268_v42, 0.0  ;;  %v3895_v21 = vpop.permute.xlu0 %974 }
 0x1ff   : > { %v1240_v28 = vadd.f32 %v1239_v59, %v3766_v0  ;;  %v1401_v59 = vmax.f32 %v1238_v14, 0.0 }
 0x200   : > { %1718 = vmatpush.bf16.msrb.mxu3 %v1491_v47  ;;  %v3877_v47 = vpop.permute.xlu1 %1049  ;;  %v1483_v43 = vpack.c.bf16 %v1427_v35, %v1425_v16  ;;  %v1405_v35 = vmax.f32 %v1243_v63, 0.0  ;;  %v1233_v16 = vadd.f32 %v3846_v25, %v3784_v9 }
 0x201   : > { %v1263_v8 = vadd.f32 %v3776_v7, %v3877_v47  ;;  %v1403_v4 = vmax.f32 %v1240_v28, 0.0 }
 0x202   : > { %v1244_v39 = vpop.f32.mrf.mxu0 }
 0x203   : > { %v1421_v23 = vmax.f32 %v1263_v8, 0.0  ;;  %v3890_v45 = vpop.f32.mrf.mxu3  ;;  %v1245_v12 = vadd.f32 %v1244_v39, %v3788_v11 }
 0x204   : > { %1719 = vmatpush.bf16.msrb.mxu3 %v1489_v32  ;;  %v3887_v24 = vpop.f32.mrf.mxu1 }
 0x205   : > { %v1481_v13 = vpack.c.bf16 %v1423_v19, %v1421_v23 }
 0x208   : > { %1720 = vmatpush.bf16.msrb.mxu3 %v1487_v44  ;;  %v1407_v44 = vmax.f32 %v1245_v12, 0.0  ;;  %v3908_v19 = vpop.permute.xlu1 %964  ;;  %v1225_v12 = vadd.f32 %v3829_v37, %v3895_v21 }
 0x209   : > { %v1220_v55 = vadd.f32 %v3809_v22, %v3908_v19 }
 0x20a   : > { %v1247_v27 = vpop.f32.mrf.mxu0 }
 0x20b   : > { %v1248_v52 = vadd.f32 %v1247_v27, %v3748_v57  ;;  %v1473_v27 = vpack.c.bf16 %v1407_v44, %v1405_v35  ;;  %v3906_v23 = vpop.f32.mrf.mxu3 }
 0x20c   : > { %1721 = vmatpush.bf16.msrb.mxu3 %v1485_v26  ;;  %v1336_v42 = vpop.f32.mrf.mxu1  ;;  %v1235_v26 = vadd.f32 %v3849_v33, %v3786_v10  ;;  %v1228_v10 = vadd.f32 %v3834_v49, %v3803_v18  ;;  %v1397_v33 = vmax.f32 %v1233_v16, 0.0 }
 0x20d   : > { %v1409_v32 = vmax.f32 %v1248_v52, 0.0 }
 0x20e   : > { %v1399_v52 = vmax.f32 %v1235_v26, 0.0  ;;  %v1393_v54 = vmax.f32 %v1228_v10, 0.0  ;;  %v1387_v26 = vmax.f32 %v1220_v55, 0.0 }
 0x210   : > { %1722 = vmatpush.bf16.msrb.mxu3 %v1483_v43  ;;  %v3910_v43 = vpop.permute.xlu2 %1039  ;;  %v1469_v63 = vpack.c.bf16 %v1399_v52, %v1397_v33  ;;  %v3924_v49 = vpop.permute.xlu1 %949 }
 0x211   : > { %v1213_v16 = vadd.f32 %v3768_v1, %v3924_v49  ;;  %v2939_v1 = vld [vmem:[%s4617_s6 + $0x4] sm:$0xf0] }
 0x212   : > { %v1249_v7 = vpop.f32.mrf.mxu0 }
 0x213   : > { %v1250_v50 = vadd.f32 %v1249_v7, %v3750_v58  ;;  %v3914_v7 = vpop.permute.xlu0 %959  ;;  %v1376_v28 = vpop.f32.mrf.mxu3 }
 0x214   : > { %1723 = vmatpush.bf16.msrb.mxu3 %v1481_v13  ;;  %v1471_v13 = vpack.c.bf16 %v1403_v4, %v1401_v59  ;;  %v1338_v9 = vpop.f32.mrf.mxu1  ;;  %v1218_v37 = vadd.f32 %v3797_v15, %v3914_v7  ;;  %v1337_v15 = vadd.f32 %v1336_v42, %v3748_v57  ;;  %v1332_v42 = vadd.f32 %v3871_v36, %v3754_v38 }
 0x215   : > { %v1411_v53 = vmax.f32 %v1250_v50, 0.0  ;;  %v1395_v50 = vmax.f32 %v1230_v51, 0.0 }
 0x216   : > { %v1385_v59 = vmax.f32 %v1218_v37, 0.0 }
 0x217   : > { %v1475_v8 = vpack.c.bf16 %v1411_v53, %v1409_v32  ;;  %v1223_v32 = vadd.f32 %v3821_v29, %v3866_v2  ;;  %v1391_v53 = vmax.f32 %v1225_v12, 0.0  ;;  %v1467_v18 = vpack.c.bf16 %v1395_v50, %v1393_v54 }
 0x218   : > { %v3926_v44 = vpop.permute.xlu2 %954  ;;  %v1463_v52 = vpack.c.bf16 %v1387_v26, %v1385_v59  ;;  %v3949_v57 = vpop.permute.xlu1 %1034  ;;  %v1374_v26 = vadd.f32 %v3906_v23, %v3761_v62  ;;  %v1367_v23 = vadd.f32 %v3868_v56, %v3772_v5  ;;  %v1369_v59 = vadd.f32 %v3885_v41, %v3825_v31  ;;  %v2798_v41 = vld [vmem:[%s4617_s6 + $0x10] sm:$0xf] }
 0x219   : > { %1669 = vmatpush.bf16.msrb.mxu2 %v1475_v8  ;;  %v1389_v8 = vmax.f32 %v1223_v32, 0.0  ;;  %v1215_v35 = vadd.f32 %v3780_v48, %v3926_v44  ;;  %v1381_v48 = vmax.f32 %v1213_v16, 0.0  ;;  %v1314_v5 = vadd.f32 %v3831_v40, %v3895_v21 }
 0x21a   : > { %v3900_v39 = vpop.f32.mrf.mxu0  ;;  %v1434_v56 = vmax.f32 %v1367_v23, 0.0 }
 0x21b   : > { %v3930_v14 = vpop.permute.xlu0 %1044  ;;  %v1465_v4 = vpack.c.bf16 %v1391_v53, %v1389_v8  ;;  %v1383_v51 = vmax.f32 %v1215_v35, 0.0  ;;  %v1378_v33 = vpop.f32.mrf.mxu3  ;;  %v1392_v21 = vmax.f32 %v1314_v5, 0.0  ;;  %v2947_v5 = vld [vmem:[%s4617_s6 + $0x44] sm:$0xf0] }
 0x21c   : > { %v3934_v22 = vpop.f32.mrf.mxu1  ;;  %v1379_v55 = vadd.f32 %v1378_v33, %v3752_v60  ;;  %v1436_v33 = vmax.f32 %v1369_v59, 0.0  ;;  %v2942_v59 = vld [vmem:[%s4617_s6 + $0x24] sm:$0xf] }
 0x21d   : > { %1670 = vmatpush.bf16.msrb.mxu2 %v1473_v27  ;;  %v1339_v27 = vadd.f32 %v1338_v9, %v3750_v58  ;;  %v2790_v58 = vld [vmem:[%s4617_s6] sm:$0xf]  ;;  %v1329_v9 = vadd.f32 %v3860_v34, %v3766_v0  ;;  %v1461_v32 = vpack.c.bf16 %v1383_v51, %v1381_v48  ;;  %v1327_v34 = vadd.f32 %v3856_v3, %v3807_v20  ;;  %v2938_v20 = vld [vmem:[%s4617_s6 + $0x4] sm:$0xf] }
 0x21e   : > { %v3960_v37 = vor.u32 %v2939_v1, %v2790_v58  ;;  %v1372_v3 = vadd.f32 %v3890_v45, %v3759_v61  ;;  %v1440_v51 = vmax.f32 %v1374_v26, 0.0  ;;  %v1312_v61 = vadd.f32 %v3823_v30, %v3866_v2  ;;  %v4642_v2 = vld [vmem:[#allocation12_spill] sm:$0xff] }
 0x21f   : > { %v1412_v10 = vmax.f32 %v1339_v27, 0.0  ;;  %v1444_v27 = vmax.f32 %v1379_v55, 0.0  ;;  %v1309_v30 = vadd.f32 %v4642_v2, %v3908_v19  ;;  %v1488_v58 = vpack.c.bf16 %v1436_v33, %v1434_v56  ;;  %v4648_v55 = vld [vmem:[#allocation10_spill] sm:$0xff]  ;;  %v2949_v2 = vld [vmem:[%s4617_s6 + $0x54] sm:$0xf0] }
 0x220   : > { %v1438_v48 = vmax.f32 %v1372_v3, 0.0  ;;  %v1390_v40 = vmax.f32 %v1312_v61, 0.0  ;;  %v2946_v33 = vld [vmem:[%s4617_s6 + $0x44] sm:$0xf] }
 0x221   : > { %1671 = vmatpush.bf16.msrb.mxu2 %v1471_v13  ;;  %v1334_v13 = vadd.f32 %v3887_v24, %v3788_v11  ;;  %v1410_v11 = vmax.f32 %v1337_v15, 0.0 }
 0x222   : > { %v1254_v25 = vpop.f32.mrf.mxu0  ;;  %v1490_v31 = vpack.c.bf16 %v1440_v51, %v1438_v48  ;;  %v2945_v51 = vld [vmem:[%s4617_s6 + $0x34] sm:$0xf0]  ;;  %v2816_v48 = vld [vmem:[%s4617_s6 + $0x38] sm:$0xf0] }
 0x223   : > { %v1255_v50 = vadd.f32 %v1254_v25, %v3949_v57  ;;  %v3957_v54 = vpop.permute.xlu0 %1029  ;;  %v1408_v53 = vmax.f32 %v1334_v13, 0.0  ;;  %v1377_v25 = vadd.f32 %v1376_v28, %v3774_v6  ;;  %v2792_v6 = vld [vmem:[%s4617_s6 + $0x8] sm:$0xf0]  ;;  %v1402_v28 = vmax.f32 %v1327_v34, 0.0 }
 0x224   : > { %v1253_v38 = vadd.f32 %v3900_v39, %v3957_v54  ;;  %v3964_v36 = vpop.f32.mrf.mxu1 }
 0x225   : > { %1672 = vmatpush.bf16.msrb.mxu2 %v1469_v63  ;;  %v1415_v60 = vmax.f32 %v1255_v50, 0.0  ;;  %v1442_v62 = vmax.f32 %v1377_v25, 0.0 }
 0x226   : > { %v1413_v16 = vmax.f32 %v1253_v38, 0.0  ;;  %v1466_v38 = vpack.c.bf16 %v1392_v21, %v1390_v40  ;;  %v2948_v40 = vld [vmem:[%s4617_s6 + $0x54] sm:$0xf]  ;;  %v2832_v21 = vld [vmem:[%s4617_s6 + $0x58] sm:$0xf0] }
 0x228   : > { %v1477_v15 = vpack.c.bf16 %v1415_v60, %v1413_v16 }
 0x229   : > { %1673 = vmatpush.bf16.msrb.mxu2 %v1467_v18  ;;  %v1476_v18 = vpack.c.bf16 %v1412_v10, %v1410_v11  ;;  %v3984_v10 = vor.u32 %v2938_v20, %v2792_v6  ;;  %v2943_v6 = vld [vmem:[%s4617_s6 + $0x24] sm:$0xf0] }
 0x22a   : > { %v1257_v29 = vpop.f32.mrf.mxu0 }
 0x22b   : > { %v1258_v12 = vadd.f32 %v1257_v29, %v3910_v43  ;;  %v1406_v29 = vmax.f32 %v1332_v42, 0.0  ;;  %v4643_v42 = vld [vmem:[#allocation11_spill] sm:$0xff] }
 0x22c   : > { %v1346_v45 = vpop.f32.mrf.mxu1  ;;  %v1307_v11 = vadd.f32 %v4643_v42, %v3914_v7  ;;  %v2838_v42 = vld [vmem:[%s4617_s6 + $0x60] sm:$0xf] }
 0x22d   : > { %1674 = vmatpush.bf16.msrb.mxu2 %v1465_v4  ;;  %v1417_v8 = vmax.f32 %v1258_v12, 0.0  ;;  %v1404_v4 = vmax.f32 %v1329_v9, 0.0  ;;  %v1474_v39 = vpack.c.bf16 %v1408_v53, %v1406_v29  ;;  %v2941_v12 = vld [vmem:[%s4617_s6 + $0x14] sm:$0xf0]  ;;  %v4645_v9 = vld [vmem:[#allocation7_spill] sm:$0xff]  ;;  %v1354_v53 = vadd.f32 %v4648_v55, %v3879_v17 }
 0x22e   : > { %v4000_v1 = vor.u32 %v2941_v12, %v2798_v41  ;;  %v1302_v50 = vadd.f32 %v4645_v9, %v3924_v49  ;;  %v2800_v49 = vld [vmem:[%s4617_s6 + $0x18] sm:$0xf0]  ;;  %v1347_v26 = vadd.f32 %v1346_v45, %v3910_v43  ;;  %v1342_v43 = vadd.f32 %v3934_v22, %v3957_v54  ;;  %v2808_v22 = vld [vmem:[%s4617_s6 + $0x28] sm:$0xf0]  ;;  %v2822_v45 = vld [vmem:[%s4617_s6 + $0x40] sm:$0xf]  ;;  %v4111_v9 = vpop.permute.xlu2 %1581 }
 0x22f   : > { %v1472_v13 = vpack.c.bf16 %v1404_v4, %v1402_v28  ;;  %v1424_v25 = vmax.f32 %v1354_v53, 0.0  ;;  %v4650_v4 = vld [vmem:[#allocation13_spill] sm:$0xff]  ;;  %v4046_v54 = vor.u32 %v2942_v59, %v2808_v22  ;;  %v4073_v56 = vor.u32 %v2947_v5, %v2822_v45  ;;  %v2830_v12 = vld [vmem:[%s4617_s6 + $0x50] sm:$0xf] }
 0x230   : > { %v1418_v3 = vmax.f32 %v1347_v26, 0.0  ;;  %v2846_v55 = vld [vmem:[%s4617_s6 + $0x70] sm:$0xf]  ;;  %v2953_v53 = vld [vmem:[%s4617_s6 + $0x74] sm:$0xf0] }
 0x231   : > { %1675 = vmatpush.bf16.msrb.mxu2 %v1463_v52  ;;  %v1492_v52 = vpack.c.bf16 %v1444_v27, %v1442_v62  ;;  %v1344_v27 = vadd.f32 %v3964_v36, %v3949_v57  ;;  %v1414_v62 = vmax.f32 %v1342_v43, 0.0 }
 0x232   : > { %v1259_v24 = vpop.f32.mrf.mxu0 }
 0x233   : > { %v1260_v63 = vadd.f32 %v1259_v24, %v3930_v14  ;;  %v4644_v24 = vld [vmem:[#allocation15_spill] sm:$0xff]  ;;  %v1416_v57 = vmax.f32 %v1344_v27, 0.0 }
 0x234   : > { %v1348_v7 = vpop.f32.mrf.mxu1 }
 0x235   : > { %v1419_v0 = vmax.f32 %v1260_v63, 0.0  ;;  %1676 = vmatpush.bf16.msrb.mxu2 %v1461_v32  ;;  %v4647_v32 = vld [vmem:[#allocation9_spill] sm:$0xff]  ;;  %v1349_v29 = vadd.f32 %v1348_v7, %v3930_v14  ;;  %v2806_v14 = vld [vmem:[%s4617_s6 + $0x20] sm:$0xf]  ;;  %v1478_v23 = vpack.c.bf16 %v1416_v57, %v1414_v62 }
 0x236   : > { %v1304_v19 = vadd.f32 %v4647_v32, %v3926_v44  ;;  %v1382_v44 = vmax.f32 %v1302_v50, 0.0  ;;  %v4037_v28 = vor.u32 %v2943_v6, %v2806_v14  ;;  %v4114_v50 = vpop.permute.xlu1 %1571  ;;  %v2952_v7 = vld [vmem:[%s4617_s6 + $0x74] sm:$0xf] }
 0x237   : > { %v1479_v35 = vpack.c.bf16 %v1419_v0, %v1417_v8  ;;  %v2940_v8 = vld [vmem:[%s4617_s6 + $0x14] sm:$0xf]  ;;  %v4649_v0 = vld [vmem:[#allocation14_spill] sm:$0xff] }
 0x238   : > { %1677 = vmatmul.bf16.vlgmr.msrb.gmra.mxu2 %v3960_v37  ;;  %v1384_v17 = vmax.f32 %v1304_v19, 0.0  ;;  %v4125_v19 = vpop.permute.xlu2 %1576 }
 0x239   : > { %1767 = vmatpush.bf16.msra.mxu2 %v1476_v18  ;;  %1724 = vmatpush.bf16.msrb.mxu3 %v1479_v35  ;;  %v1388_v18 = vmax.f32 %v1309_v30, 0.0  ;;  %v4022_v35 = vor.u32 %v2940_v8, %v2800_v49  ;;  %v4091_v30 = vor.u32 %v2949_v2, %v2830_v12  ;;  %v2848_v8 = vld [vmem:[%s4617_s6 + $0x78] sm:$0xf0] }
 0x23a   : > { %v1462_v16 = vpack.c.bf16 %v1384_v17, %v1382_v44  ;;  %v4151_v44 = vpop.permute.xlu0 %1586 }
 0x23d   : > { %1768 = vmatpush.bf16.msra.mxu2 %v1474_v39  ;;  %1725 = vmatpush.bf16.msrb.mxu3 %v1477_v15  ;;  %v1420_v39 = vmax.f32 %v1349_v29, 0.0  ;;  %v2814_v15 = vld [vmem:[%s4617_s6 + $0x30] sm:$0xf] }
 0x23f   : > { %v1480_v36 = vpack.c.bf16 %v1420_v39, %v1418_v3 }
 0x240   : > { %1726 = vmatmul.bf16.vlgmr.msrb.gmra.mxu3 %v3984_v10  ;;  %v4144_v49 = vpop.permute.xlu2 %1551 }
 0x241   : > { %1769 = vmatpush.bf16.msra.mxu2 %v1472_v13  ;;  %1816 = vmatpush.bf16.msra.mxu3 %v1492_v52  ;;  %v4055_v52 = vor.u32 %v2945_v51, %v2814_v15  ;;  %v2944_v13 = vld [vmem:[%s4617_s6 + $0x34] sm:$0xf] }
 0x242   : > { %v4064_v61 = vor.u32 %v2944_v13, %v2816_v48 }
 0x245   : > { %1770 = vmatpush.bf16.msra.mxu2 %v3852_v46  ;;  %1817 = vmatpush.bf16.msra.mxu3 %v1490_v31  ;;  %v4646_v46 = vld [vmem:[#allocation8_spill] sm:$0xff] }
 0x246   : > { %v1352_v63 = vadd.f32 %v4646_v46, %v3877_v47  ;;  %v1386_v47 = vmax.f32 %v1307_v11, 0.0  ;;  %v2824_v31 = vld [vmem:[%s4617_s6 + $0x48] sm:$0xf0]  ;;  %v2951_v11 = vld [vmem:[%s4617_s6 + $0x64] sm:$0xf0] }
 0x247   : > { %v4082_v41 = vor.u32 %v2946_v33, %v2824_v31  ;;  %v2950_v46 = vld [vmem:[%s4617_s6 + $0x64] sm:$0xf] }
 0x248   : > { %1682 = vmatmul.bf16.gmra.mxu2 %v4000_v1  ;;  %v1422_v34 = vmax.f32 %v1352_v63, 0.0  ;;  %v1464_v60 = vpack.c.bf16 %v1388_v18, %v1386_v47  ;;  %v2840_v63 = vld [vmem:[%s4617_s6 + $0x68] sm:$0xf0]  ;;  %v4133_v18 = vpop.permute.xlu1 %1566  ;;  %v4146_v47 = vor.u32 %v2952_v7, %v2848_v8 }
 0x249   : > { %1771 = vmatpush.bf16.msra.mxu2 %v4644_v24  ;;  %1818 = vmatpush.bf16.msra.mxu3 %v1488_v58  ;;  %v4100_v58 = vor.u32 %v2948_v40, %v2832_v21  ;;  %v4109_v24 = vor.u32 %v2951_v11, %v2838_v42  ;;  %v4122_v32 = vor.u32 %v2950_v46, %v2840_v63 }
 0x24a   : > { %v1482_v20 = vpack.c.bf16 %v1424_v25, %v1422_v34  ;;  %v4153_v34 = vpop.permute.xlu2 %1546  ;;  %v4158_v25 = vpop.permute.xlu0 %1561 }
 0x24d   : > { %1772 = vmatpush.bf16.msra.mxu2 %v1466_v38  ;;  %1819 = vmatpush.bf16.msra.mxu3 %v4649_v0  ;;  %v4135_v38 = vor.u32 %v2953_v53, %v2846_v55 }
 0x250   : > { %1731 = vmatmul.bf16.gmra.mxu3 %v4022_v35  ;;  %v4148_v0 = vpop.permute.xlu1 %1541 }
 0x251   : > { %1773 = vmatpush.bf16.msra.mxu2 %v1464_v60  ;;  %1820 = vmatpush.bf16.msra.mxu3 %v4650_v4 }
 0x252   : > { %v4160_v60 = vpop.permute.xlu2 %1521 }
 0x255   : > { %1774 = vmatpush.bf16.msra.mxu2 %v1462_v16  ;;  %1821 = vmatpush.bf16.msra.mxu3 %v1482_v20  ;;  %v4166_v20 = vpop.permute.xlu0 %1556 }
 0x258   : > { %1687 = vmatmul.bf16.gmra.mxu2 %v4037_v28  ;;  %v4155_v17 = vpop.permute.xlu1 %1536 }
 0x259   : > { %1822 = vmatpush.bf16.msra.mxu3 %v1480_v36 }
 0x25a   : > { %v4169_v14 = vpop.permute.xlu2 %1516 }
 0x25d   : > { %1823 = vmatpush.bf16.msra.mxu3 %v1478_v23  ;;  %v4172_v36 = vpop.permute.xlu0 %1531 }
 0x260   : > { %1736 = vmatmul.bf16.gmra.mxu3 %v4046_v54  ;;  %v4163_v26 = vpop.permute.xlu1 %1511 }
 0x265   : > { %v4179_v15 = vpop.permute.xlu0 %1526 }
 0x268   : > { %1692 = vmatmul.bf16.gmra.mxu2 %v4055_v52 }
 0x270   : > { %1741 = vmatmul.bf16.gmra.mxu3 %v4064_v61 }
 0x278   : > { %1697 = vmatmul.bf16.gmra.mxu2 %v4073_v56 }
 0x280   : > { %1746 = vmatmul.bf16.gmra.mxu3 %v4082_v41 }
 0x288   : > { %1702 = vmatmul.bf16.gmra.mxu2 %v4091_v30 }
 0x290   : > { %1751 = vmatmul.bf16.gmra.mxu3 %v4100_v58 }
 0x298   : > { %1707 = vmatmul.bf16.gmra.mxu2 %v4109_v24 }
 0x2a0   : > { %1756 = vmatmul.bf16.gmra.mxu3 %v4122_v32 }
 0x2a8   : > { %1712 = vmatmul.bf16.gmra.mxu2 %v4135_v38 }
 0x2b0   : > { %1761 = vmatmul.bf16.gmra.mxu3 %v4146_v47 }
 0x2b8   : > { %1775 = vmatmul.bf16.vlgmr.msra.gmra.mxu2 %v3960_v37 }
 0x2bb   : > { %v1678_v29 = vpop.f32.mrf.mxu2 }
 0x2bc   : > { %v1679_v4 = vadd.f32 %v1678_v29, %v4163_v26 }
 0x2c0   : > { %1824 = vmatmul.bf16.vlgmr.msra.gmra.mxu3 %v3984_v10 }
 0x2c3   : > { %v1680_v27 = vpop.f32.mrf.mxu2  ;;  %v1727_v39 = vpop.f32.mrf.mxu3 }
 0x2c4   : > { %v1728_v16 = vadd.f32 %v1727_v39, %v1679_v4  ;;  %v1681_v37 = vadd.f32 %v1680_v27, %v4169_v14 }
 0x2c6   : > { %v1865_v57 = vmax.f32 %v1728_v16, 0.0 }
 0x2c8   : > { %1780 = vmatmul.bf16.gmra.mxu2 %v4000_v1 }
 0x2cb   : > { %v1683_v6 = vpop.f32.mrf.mxu2  ;;  %v1729_v43 = vpop.f32.mrf.mxu3 }
 0x2cc   : > { %v1730_v3 = vadd.f32 %v1729_v43, %v1681_v37  ;;  %v1684_v23 = vadd.f32 %v1683_v6, %v4160_v60 }
 0x2ce   : > { %v1867_v10 = vmax.f32 %v1730_v3, 0.0 }
 0x2d0   : > { %1829 = vmatmul.bf16.gmra.mxu3 %v4022_v35  ;;  %v4175_v62 = vpack.c.bf16 %v1867_v10, %v1865_v57 }
 0x2d3   : > { %v1685_v59 = vpop.f32.mrf.mxu2  ;;  %v1732_v22 = vpop.f32.mrf.mxu3 }
 0x2d4   : > { %v1733_v1 = vadd.f32 %v1732_v22, %v1684_v23  ;;  %v1686_v51 = vadd.f32 %v1685_v59, %v4179_v15 }
 0x2d6   : > { %v1869_v5 = vmax.f32 %v1733_v1, 0.0 }
 0x2d8   : > { %1785 = vmatmul.bf16.gmra.mxu2 %v4037_v28 }
 0x2db   : > { %v1688_v13 = vpop.f32.mrf.mxu2  ;;  %v1734_v48 = vpop.f32.mrf.mxu3 }
 0x2dc   : > { %v1735_v45 = vadd.f32 %v1734_v48, %v1686_v51  ;;  %v1689_v31 = vadd.f32 %v1688_v13, %v4172_v36 }
 0x2de   : > { %v1871_v33 = vmax.f32 %v1735_v45, 0.0 }
 0x2e0   : > { %1834 = vmatmul.bf16.gmra.mxu3 %v4046_v54  ;;  %v4183_v35 = vpack.c.bf16 %v1871_v33, %v1869_v5 }
 0x2e3   : > { %v1690_v12 = vpop.f32.mrf.mxu2  ;;  %v1737_v2 = vpop.f32.mrf.mxu3 }
 0x2e4   : > { %v1738_v40 = vadd.f32 %v1737_v2, %v1689_v31  ;;  %v1691_v28 = vadd.f32 %v1690_v12, %v4155_v17 }
 0x2e6   : > { %v1873_v46 = vmax.f32 %v1738_v40, 0.0 }
 0x2e8   : > { %1790 = vmatmul.bf16.gmra.mxu2 %v4055_v52 }
 0x2eb   : > { %v1693_v21 = vpop.f32.mrf.mxu2  ;;  %v1739_v42 = vpop.f32.mrf.mxu3 }
 0x2ec   : > { %v1740_v11 = vadd.f32 %v1739_v42, %v1691_v28  ;;  %v1694_v54 = vadd.f32 %v1693_v21, %v4148_v0 }
 0x2ee   : > { %v1875_v63 = vmax.f32 %v1740_v11, 0.0 }
 0x2f0   : > { %1839 = vmatmul.bf16.gmra.mxu3 %v4064_v61  ;;  %v4189_v55 = vpack.c.bf16 %v1875_v63, %v1873_v46 }
 0x2f3   : > { %v1695_v53 = vpop.f32.mrf.mxu2  ;;  %v1742_v7 = vpop.f32.mrf.mxu3 }
 0x2f4   : > { %v1743_v8 = vadd.f32 %v1742_v7, %v1694_v54  ;;  %v1696_v52 = vadd.f32 %v1695_v53, %v4153_v34 }
 0x2f6   : > { %v1877_v39 = vmax.f32 %v1743_v8, 0.0 }
 0x2f8   : > { %1795 = vmatmul.bf16.gmra.mxu2 %v4073_v56 }
 0x2fb   : > { %v1698_v29 = vpop.f32.mrf.mxu2  ;;  %v1744_v4 = vpop.f32.mrf.mxu3 }
 0x2fc   : > { %v1745_v27 = vadd.f32 %v1744_v4, %v1696_v52  ;;  %v1699_v53 = vadd.f32 %v1698_v29, %v4144_v49 }
 0x2fe   : > { %v1879_v16 = vmax.f32 %v1745_v27, 0.0 }
 0x300   : > { %1844 = vmatmul.bf16.gmra.mxu3 %v4082_v41  ;;  %v4195_v37 = vpack.c.bf16 %v1879_v16, %v1877_v39 }
 0x303   : > { %v1700_v61 = vpop.f32.mrf.mxu2  ;;  %v1747_v6 = vpop.f32.mrf.mxu3 }
 0x304   : > { %v1701_v11 = vadd.f32 %v1700_v61, %v4166_v20  ;;  %v1748_v16 = vadd.f32 %v1747_v6, %v1699_v53 }
 0x308   : > { %1800 = vmatmul.bf16.gmra.mxu2 %v4091_v30 }
 0x30b   : > { %v1703_v43 = vpop.f32.mrf.mxu2  ;;  %v1749_v3 = vpop.f32.mrf.mxu3 }
 0x30c   : > { %v1704_v40 = vadd.f32 %v1703_v43, %v4158_v25  ;;  %v1750_v52 = vadd.f32 %v1749_v3, %v1701_v11 }
 0x310   : > { %1849 = vmatmul.bf16.gmra.mxu3 %v4100_v58 }
 0x313   : > { %v1705_v56 = vpop.f32.mrf.mxu2  ;;  %v1752_v57 = vpop.f32.mrf.mxu3 }
 0x314   : > { %v1753_v46 = vadd.f32 %v1752_v57, %v1704_v40 }
 0x316   : > { %v1885_v43 = vmax.f32 %v1753_v46, 0.0 }
 0x318   : > { %1805 = vmatmul.bf16.gmra.mxu2 %v4109_v24 }
 0x31b   : > { %v1708_v10 = vpop.f32.mrf.mxu2  ;;  %v1754_v23 = vpop.f32.mrf.mxu3 }
 0x320   : > { %1854 = vmatmul.bf16.gmra.mxu3 %v4122_v32  ;;  %v1709_v32 = vadd.f32 %v1708_v10, %v4114_v50 }
 0x323   : > { %v1710_v59 = vpop.f32.mrf.mxu2  ;;  %v1757_v41 = vpop.f32.mrf.mxu3 }
 0x324   : > { %v1711_v13 = vadd.f32 %v1710_v59, %v4125_v19  ;;  %v1758_v12 = vadd.f32 %v1757_v41, %v1709_v32 }
 0x326   : > { %v1889_v63 = vmax.f32 %v1758_v12, 0.0  ;;  %v4234_v12 = vld [vmem:[%s4618_s7 + $0x8] sm:$0xff] }
 0x328   : > { %1810 = vmatmul.bf16.gmra.mxu2 %v4135_v38  ;;  %v1706_v38 = vadd.f32 %v1705_v56, %v4133_v18  ;;  %v1883_v56 = vmax.f32 %v1750_v52, 0.0 }
 0x32a   : > { %v1755_v28 = vadd.f32 %v1754_v23, %v1706_v38  ;;  %v1881_v23 = vmax.f32 %v1748_v16, 0.0 }
 0x32b   : > { %v1713_v22 = vpop.f32.mrf.mxu2  ;;  %v1759_v1 = vpop.f32.mrf.mxu3 }
 0x32c   : > { %v1714_v58 = vadd.f32 %v1713_v22, %v4111_v9  ;;  %v1760_v33 = vadd.f32 %v1759_v1, %v1711_v13  ;;  %v1887_v4 = vmax.f32 %v1755_v28, 0.0  ;;  %v1937_v41 = vpack.c.bf16 %v1883_v56, %v1881_v23 }
 0x32e   : > { %v1891_v21 = vmax.f32 %v1760_v33, 0.0  ;;  %v1939_v10 = vpack.c.bf16 %v1887_v4, %v1885_v43 }
 0x330   : > { %1859 = vmatmul.bf16.gmra.mxu3 %v4146_v47  ;;  %v1941_v39 = vpack.c.bf16 %v1891_v21, %v1889_v63  ;;  %v4244_v63 = vld [vmem:[%s4618_s7 + $0x10] sm:$0xff] }
 0x333   : > { %v1715_v30 = vpop.f32.mrf.mxu2  ;;  %v1762_v51 = vpop.f32.mrf.mxu3 }
 0x334   : > { %v1716_v24 = vadd.f32 %v1715_v30, %v4151_v44  ;;  %v1763_v48 = vadd.f32 %v1762_v51, %v1714_v58 }
 0x336   : > { %v1893_v2 = vmax.f32 %v1763_v48, 0.0  ;;  %v4223_v48 = vld [vmem:[%s4618_s7] sm:$0xff] }
 0x33b   : > { %v1764_v45 = vpop.f32.mrf.mxu3  ;;  %v1776_v5 = vpop.f32.mrf.mxu2 }
 0x33c   : > { %v1765_v31 = vadd.f32 %v1764_v45, %v1716_v24  ;;  %v1777_v54 = vadd.f32 %v1776_v5, %v4163_v26 }
 0x33e   : > { %v1895_v47 = vmax.f32 %v1765_v31, 0.0 }
 0x340   : > { %v1943_v42 = vpack.c.bf16 %v1895_v47, %v1893_v2 }
 0x342   : > { %2233 = vmatpush.bf16.msrb.mxu0 %v1943_v42 }
 0x343   : > { %v1778_v7 = vpop.f32.mrf.mxu2  ;;  %v1825_v8 = vpop.f32.mrf.mxu3 }
 0x344   : > { %v1826_v27 = vadd.f32 %v1825_v8, %v1777_v54  ;;  %v1779_v61 = vadd.f32 %v1778_v7, %v4169_v14 }
 0x346   : > { %2234 = vmatpush.bf16.msrb.mxu0 %v1941_v39  ;;  %v1866_v29 = vmax.f32 %v1826_v27, 0.0  ;;  %v4251_v39 = vld [vmem:[%s4618_s7 + $0x18] sm:$0xff] }
 0x34a   : > { %2235 = vmatpush.bf16.msrb.mxu0 %v1939_v10 }
 0x34b   : > { %v1781_v57 = vpop.f32.mrf.mxu2  ;;  %v1827_v26 = vpop.f32.mrf.mxu3 }
 0x34c   : > { %v1828_v59 = vadd.f32 %v1827_v26, %v1779_v61  ;;  %v1782_v1 = vadd.f32 %v1781_v57, %v4160_v60 }
 0x34e   : > { %v1868_v22 = vmax.f32 %v1828_v59, 0.0  ;;  %2236 = vmatpush.bf16.msrb.mxu0 %v1937_v41  ;;  %v4263_v59 = vld [vmem:[%s4618_s7 + $0x28] sm:$0xff] }
 0x350   : > { %v4213_v3 = vpack.c.bf16 %v1868_v22, %v1866_v29 }
 0x352   : > { %2237 = vmatpush.bf16.msrb.mxu0 %v4195_v37 }
 0x353   : > { %v1783_v6 = vpop.f32.mrf.mxu2  ;;  %v1830_v30 = vpop.f32.mrf.mxu3 }
 0x354   : > { %v1831_v51 = vadd.f32 %v1830_v30, %v1782_v1  ;;  %v1784_v14 = vadd.f32 %v1783_v6, %v4179_v15 }
 0x356   : > { %2238 = vmatpush.bf16.msrb.mxu0 %v4189_v55  ;;  %v1870_v60 = vmax.f32 %v1831_v51, 0.0 }
 0x35a   : > { %2239 = vmatpush.bf16.msrb.mxu0 %v4183_v35 }
 0x35b   : > { %v1786_v58 = vpop.f32.mrf.mxu2  ;;  %v1832_v13 = vpop.f32.mrf.mxu3 }
 0x35c   : > { %v1833_v24 = vadd.f32 %v1832_v13, %v1784_v14  ;;  %v1787_v15 = vadd.f32 %v1786_v58, %v4172_v36 }
 0x35e   : > { %v1872_v45 = vmax.f32 %v1833_v24, 0.0  ;;  %2240 = vmatpush.bf16.msrb.mxu0 %v4175_v62  ;;  %v4273_v24 = vld [vmem:[%s4618_s7 + $0x30] sm:$0xff] }
 0x360   : > { %v4226_v37 = vpack.c.bf16 %v1872_v45, %v1870_v60 }
 0x361   : > { %2241 = vmatmul.bf16.vlgmr.msrb.gmra.mxu0 %v4223_v48 }
 0x363   : > { %v1788_v55 = vpop.f32.mrf.mxu2  ;;  %v1835_v35 = vpop.f32.mrf.mxu3 }
 0x364   : > { %v1836_v5 = vadd.f32 %v1835_v35, %v1787_v15  ;;  %v1789_v32 = vadd.f32 %v1788_v55, %v4155_v17 }
 0x366   : > { %v1874_v62 = vmax.f32 %v1836_v5, 0.0 }
 0x36b   : > { %v1791_v33 = vpop.f32.mrf.mxu2  ;;  %v1837_v31 = vpop.f32.mrf.mxu3 }
 0x36c   : > { %v1838_v38 = vadd.f32 %v1837_v31, %v1789_v32  ;;  %v1792_v36 = vadd.f32 %v1791_v33, %v4148_v0 }
 0x36e   : > { %v1876_v2 = vmax.f32 %v1838_v38, 0.0 }
 0x370   : > { %v4236_v47 = vpack.c.bf16 %v1876_v2, %v1874_v62 }
 0x371   : > { %2246 = vmatmul.bf16.gmra.mxu0 %v4234_v12 }
 0x373   : > { %v1793_v40 = vpop.f32.mrf.mxu2  ;;  %v1840_v28 = vpop.f32.mrf.mxu3 }
 0x374   : > { %v1841_v21 = vadd.f32 %v1840_v28, %v1792_v36  ;;  %v1794_v17 = vadd.f32 %v1793_v40, %v4153_v34  ;;  %v4282_v40 = vld [vmem:[%s4618_s7 + $0x38] sm:$0xff] }
 0x376   : > { %v1878_v54 = vmax.f32 %v1841_v21, 0.0 }
 0x37b   : > { %v1796_v42 = vpop.f32.mrf.mxu2  ;;  %v1842_v11 = vpop.f32.mrf.mxu3 }
 0x37c   : > { %v1843_v46 = vadd.f32 %v1842_v11, %v1794_v17  ;;  %v1797_v0 = vadd.f32 %v1796_v42, %v4144_v49  ;;  %v4257_v49 = vld [vmem:[%s4618_s7 + $0x20] sm:$0xff]  ;;  %v4324_v11 = vld [vmem:[%s4618_s7 + $0x58] sm:$0xff] }
 0x37e   : > { %v1880_v53 = vmax.f32 %v1843_v46, 0.0  ;;  %v4330_v46 = vpop.permute.xlu0 %2054 }
 0x380   : > { %v1936_v7 = vpack.c.bf16 %v1880_v53, %v1878_v54  ;;  %v4334_v53 = vpop.permute.xlu2 %2134 }
 0x381   : > { %2251 = vmatmul.bf16.gmra.mxu0 %v4244_v63 }
 0x383   : > { %v1798_v8 = vpop.f32.mrf.mxu2  ;;  %v1845_v52 = vpop.f32.mrf.mxu3 }
 0x384   : > { %v1846_v4 = vadd.f32 %v1845_v52, %v1797_v0 }
 0x386   : > { %v1882_v36 = vmax.f32 %v1846_v4, 0.0 }
 0x388   : > { %v4345_v52 = vpop.permute.xlu2 %2039 }
 0x38b   : > { %v1801_v27 = vpop.f32.mrf.mxu2  ;;  %v1847_v34 = vpop.f32.mrf.mxu3 }
 0x391   : > { %2256 = vmatmul.bf16.gmra.mxu0 %v4251_v39 }
 0x393   : > { %v1803_v16 = vpop.f32.mrf.mxu2  ;;  %v1850_v43 = vpop.f32.mrf.mxu3 }
 0x394   : > { %v1804_v60 = vadd.f32 %v1803_v16, %v4133_v18  ;;  %v4358_v16 = vld [vmem:[%s4618_s7 + $0x68] sm:$0xff] }
 0x39b   : > { %v1806_v56 = vpop.f32.mrf.mxu2  ;;  %v1852_v10 = vpop.f32.mrf.mxu3 }
 0x39c   : > { %v1807_v14 = vadd.f32 %v1806_v56, %v4114_v50  ;;  %v1853_v55 = vadd.f32 %v1852_v10, %v1804_v60  ;;  %v1799_v50 = vadd.f32 %v1798_v8, %v4166_v20  ;;  %v4290_v20 = vld [vmem:[%s4618_s7 + $0x40] sm:$0xff]  ;;  %v4343_v8 = vpop.permute.xlu0 %2044 }
 0x39e   : > { %v1848_v33 = vadd.f32 %v1847_v34, %v1799_v50  ;;  %v1888_v31 = vmax.f32 %v1853_v55, 0.0 }
 0x3a0   : > { %v1884_v18 = vmax.f32 %v1848_v33, 0.0 }
 0x3a1   : > { %2261 = vmatmul.bf16.gmra.mxu0 %v4257_v49 }
 0x3a3   : > { %v1808_v23 = vpop.f32.mrf.mxu2  ;;  %v1855_v61 = vpop.f32.mrf.mxu3 }
 0x3a4   : > { %v1809_v1 = vadd.f32 %v1808_v23, %v4125_v19  ;;  %v1856_v45 = vadd.f32 %v1855_v61, %v1807_v14  ;;  %v1802_v19 = vadd.f32 %v1801_v27, %v4158_v25  ;;  %v1938_v25 = vpack.c.bf16 %v1884_v18, %v1882_v36  ;;  %v4351_v34 = vpop.permute.xlu0 %2124 }
 0x3a6   : > { %v1851_v5 = vadd.f32 %v1850_v43, %v1802_v19  ;;  %v1890_v32 = vmax.f32 %v1856_v45, 0.0 }
 0x3a8   : > { %v1886_v62 = vmax.f32 %v1851_v5, 0.0 }
 0x3aa   : > { %v1940_v2 = vpack.c.bf16 %v1888_v31, %v1886_v62 }
 0x3ab   : > { %v1857_v57 = vpop.f32.mrf.mxu3  ;;  %v1811_v26 = vpop.f32.mrf.mxu2 }
 0x3ac   : > { %v1812_v22 = vadd.f32 %v1811_v26, %v4111_v9  ;;  %v1858_v58 = vadd.f32 %v1857_v57, %v1809_v1  ;;  %v4364_v10 = vpop.permute.xlu0 %2029  ;;  %v4375_v26 = vld [vmem:[%s4618_s7 + $0x70] sm:$0xff] }
 0x3b1   : > { %2266 = vmatmul.bf16.gmra.mxu0 %v4263_v59 }
 0x3b3   : > { %v1860_v41 = vpop.f32.mrf.mxu3  ;;  %v1813_v29 = vpop.f32.mrf.mxu2 }
 0x3b4   : > { %v1814_v6 = vadd.f32 %v1813_v29, %v4151_v44  ;;  %v1861_v30 = vadd.f32 %v1860_v41, %v1812_v22  ;;  %v1892_v44 = vmax.f32 %v1858_v58, 0.0  ;;  %v4370_v57 = vpop.permute.xlu0 %2109 }
 0x3b6   : > { %v1894_v15 = vmax.f32 %v1861_v30, 0.0  ;;  %v1942_v38 = vpack.c.bf16 %v1892_v44, %v1890_v32  ;;  %v4390_v30 = vld [vmem:[%s4618_s7 + $0x78] sm:$0xff] }
 0x3bb   : > { %v1862_v51 = vpop.f32.mrf.mxu3 }
 0x3bc   : > { %v1863_v13 = vadd.f32 %v1862_v51, %v1814_v6  ;;  %v4383_v1 = vpop.permute.xlu0 %2014 }
 0x3be   : > { %v1896_v9 = vmax.f32 %v1863_v13, 0.0 }
 0x3c0   : > { %v1944_v35 = vpack.c.bf16 %v1896_v9, %v1894_v15 }
 0x3c1   : > { %2271 = vmatmul.bf16.gmra.mxu0 %v4273_v24 }
 0x3c2   : > { %2322 = vmatpush.bf16.msrb.mxu1 %v1944_v35 }
 0x3c4   : > { %v4394_v58 = vpop.permute.xlu0 %2094 }
 0x3c6   : > { %2323 = vmatpush.bf16.msrb.mxu1 %v1942_v38 }
 0x3ca   : > { %2324 = vmatpush.bf16.msrb.mxu1 %v1940_v2 }
 0x3cc   : > { %v4405_v55 = vpop.permute.xlu0 %1999 }
 0x3ce   : > { %2325 = vmatpush.bf16.msrb.mxu1 %v1938_v25 }
 0x3d1   : > { %2276 = vmatmul.bf16.gmra.mxu0 %v4282_v40 }
 0x3d2   : > { %2326 = vmatpush.bf16.msrb.mxu1 %v1936_v7  ;;  %v4341_v7 = vld [vmem:[%s4618_s7 + $0x60] sm:$0xff] }
 0x3d6   : > { %2327 = vmatpush.bf16.msrb.mxu1 %v4236_v47  ;;  %v4302_v47 = vld [vmem:[%s4618_s7 + $0x48] sm:$0xff] }
 0x3da   : > { %2328 = vmatpush.bf16.msrb.mxu1 %v4226_v37 }
 0x3de   : > { %v4292_v28 = vpop.f32.mrf.mxu0  ;;  %2329 = vmatpush.bf16.msrb.mxu1 %v4213_v3  ;;  %v4313_v3 = vld [vmem:[%s4618_s7 + $0x50] sm:$0xff] }
 0x3e1   : > { %2281 = vmatmul.bf16.gmra.mxu0 %v4290_v20  ;;  %2330 = vmatmul.bf16.vlgmr.msrb.gmra.mxu1 %v4223_v48 }
 0x3e6   : > { %v4297_v21 = vpop.f32.mrf.mxu0 }
 0x3ee   : > { %v4304_v37 = vpop.f32.mrf.mxu0 }
 0x3f1   : > { %2286 = vmatmul.bf16.gmra.mxu0 %v4302_v47  ;;  %2335 = vmatmul.bf16.gmra.mxu1 %v4234_v12 }
 0x3f6   : > { %v4308_v17 = vpop.f32.mrf.mxu0 }
 0x3fe   : > { %v4315_v48 = vpop.f32.mrf.mxu0 }
 0x401   : > { %2291 = vmatmul.bf16.gmra.mxu0 %v4313_v3  ;;  %2340 = vmatmul.bf16.gmra.mxu1 %v4244_v63  ;;  %v4336_v63 = vpop.permute.xlu1 %2049 }
 0x406   : > { %v4319_v42 = vpop.f32.mrf.mxu0 }
 0x409   : > { %v4349_v27 = vpop.permute.xlu1 %2129 }
 0x40e   : > { %v4326_v12 = vpop.f32.mrf.mxu0 }
 0x411   : > { %2296 = vmatmul.bf16.gmra.mxu0 %v4324_v11  ;;  %2345 = vmatmul.bf16.gmra.mxu1 %v4251_v39  ;;  %v4353_v39 = vpop.permute.xlu2 %2119  ;;  %v4360_v56 = vpop.permute.xlu1 %2034 }
 0x416   : > { %v4332_v54 = vpop.f32.mrf.mxu0 }
 0x419   : > { %v4368_v61 = vpop.permute.xlu1 %2114 }
 0x41e   : > { %v2262_v0 = vpop.f32.mrf.mxu0 }
 0x421   : > { %2301 = vmatmul.bf16.gmra.mxu0 %v4341_v7  ;;  %2350 = vmatmul.bf16.gmra.mxu1 %v4257_v49  ;;  %v4366_v49 = vpop.permute.xlu2 %2024 }
 0x426   : > { %v2264_v4 = vpop.f32.mrf.mxu0 }
 0x427   : > { %v2265_v18 = vadd.f32 %v2264_v4, %v4366_v49 }
 0x429   : > { %v4377_v29 = vpop.permute.xlu2 %2104 }
 0x42e   : > { %v2267_v43 = vpop.f32.mrf.mxu0 }
 0x42f   : > { %v2268_v38 = vadd.f32 %v2267_v43, %v4364_v10  ;;  %v2429_v43 = vmax.f32 %v2265_v18, 0.0 }
 0x431   : > { %2306 = vmatmul.bf16.gmra.mxu0 %v4358_v16  ;;  %2355 = vmatmul.bf16.gmra.mxu1 %v4263_v59  ;;  %v4381_v59 = vpop.permute.xlu1 %2019  ;;  %v4385_v6 = vpop.permute.xlu2 %2009 }
 0x432   : > { %v2263_v25 = vadd.f32 %v2262_v0, %v4381_v59 }
 0x436   : > { %v2269_v23 = vpop.f32.mrf.mxu0 }
 0x437   : > { %v2270_v5 = vadd.f32 %v2269_v23, %v4360_v56  ;;  %v4421_v23 = vpop.permute.xlu0 %2079 }
 0x439   : > { %v4392_v14 = vpop.permute.xlu1 %2099  ;;  %v4398_v13 = vpop.permute.xlu2 %2089  ;;  %v2433_v2 = vmax.f32 %v2270_v5, 0.0 }
 0x43e   : > { %v2272_v41 = vpop.f32.mrf.mxu0 }
 0x43f   : > { %v2273_v44 = vadd.f32 %v2272_v41, %v4345_v52  ;;  %v2260_v41 = vadd.f32 %v4332_v54, %v4383_v1  ;;  %v2253_v54 = vadd.f32 %v4315_v48, %v4405_v55 }
 0x441   : > { %2311 = vmatmul.bf16.gmra.mxu0 %v4375_v26  ;;  %2360 = vmatmul.bf16.gmra.mxu1 %v4273_v24  ;;  %v4402_v15 = vpop.permute.xlu1 %2004  ;;  %v4408_v50 = vpop.permute.xlu2 %1994  ;;  %v2435_v62 = vmax.f32 %v2273_v44, 0.0  ;;  %v2419_v5 = vmax.f32 %v2253_v54, 0.0 }
 0x442   : > { %v2255_v0 = vadd.f32 %v4319_v42, %v4402_v15 }
 0x446   : > { %v2274_v22 = vpop.f32.mrf.mxu0 }
 0x447   : > { %v2275_v9 = vadd.f32 %v2274_v22, %v4343_v8 }
 0x449   : > { %v2437_v32 = vmax.f32 %v2275_v9, 0.0  ;;  %v4418_v36 = vpop.permute.xlu1 %2084 }
 0x44e   : > { %v2277_v51 = vpop.f32.mrf.mxu0 }
 0x44f   : > { %v2278_v60 = vadd.f32 %v2277_v51, %v4336_v63  ;;  %v2427_v51 = vmax.f32 %v2263_v25, 0.0 }
 0x451   : > { %2316 = vmatmul.bf16.gmra.mxu0 %v4390_v30  ;;  %2365 = vmatmul.bf16.gmra.mxu1 %v4282_v40  ;;  %v2439_v35 = vmax.f32 %v2278_v60, 0.0  ;;  %v2431_v40 = vmax.f32 %v2268_v38, 0.0  ;;  %v2425_v60 = vmax.f32 %v2260_v41, 0.0  ;;  %v4437_v9 = vpop.permute.xlu1 %1989 }
 0x452   : > { %4655 = vst [vmem:[#allocation8_spill] sm:$0xff] %v4437_v9  ;;  %v2248_v42 = vadd.f32 %v4304_v37, %v4437_v9  ;;  %v4459_v37 = vld [vmem:[%s4620_s9] sm:$0x3] }
 0x453   : > { %4660 = vst [vmem:[#allocation16_spill] sm:$0xff] %v4459_v37 }
 0x454   : > { %v2415_v18 = vmax.f32 %v2248_v42, 0.0 }
 0x456   : > { %v2279_v24 = vpop.f32.mrf.mxu0 }
 0x457   : > { %v2280_v45 = vadd.f32 %v2279_v24, %v4330_v46  ;;  %v4431_v24 = vpop.permute.xlu2 %2074 }
 0x459   : > { %v2441_v19 = vmax.f32 %v2280_v45, 0.0 }
 0x45b   : > { %2488 = vmatpush.msrb.mxu2 %v2441_v19  ;;  %v2250_v19 = vadd.f32 %v4308_v17, %v4408_v50 }
 0x45d   : > { %2489 = vmatpush.msrb.mxu2 %v2439_v35  ;;  %v2417_v38 = vmax.f32 %v2250_v19, 0.0 }
 0x45e   : > { %v4411_v33 = vpop.f32.mrf.mxu0  ;;  %v4413_v31 = vpop.f32.mrf.mxu1 }
 0x45f   : > { %4651 = vst [vmem:[#allocation12_spill] sm:$0xff] %v4411_v33  ;;  %2490 = vmatpush.msrb.mxu2 %v2437_v32  ;;  %v4447_v32 = vpop.permute.xlu0 %1984  ;;  %v4452_v17 = vpop.permute.xlu2 %1979 }
 0x460   : > { %4652 = vst [vmem:[#allocation11_spill] sm:$0xff] %v4413_v31  ;;  %v2245_v48 = vadd.f32 %v4297_v21, %v4447_v32 }
 0x461   : > { %2370 = vmatmul.bf16.gmra.mxu1 %v4290_v20  ;;  %2491 = vmatpush.msrb.mxu2 %v2435_v62  ;;  %v2258_v20 = vadd.f32 %v4326_v12, %v4385_v6  ;;  %v2421_v12 = vmax.f32 %v2255_v0, 0.0  ;;  %4658 = vst [vmem:[#allocation14_spill] sm:$0xff] %v4447_v32  ;;  %v2243_v62 = vadd.f32 %v4292_v28, %v4452_v17 }
 0x462   : > { %4659 = vst [vmem:[#allocation13_spill] sm:$0xff] %v4452_v17 }
 0x463   : > { %2492 = vmatpush.msrb.mxu2 %v2433_v2  ;;  %v2423_v45 = vmax.f32 %v2258_v20, 0.0  ;;  %v2413_v2 = vmax.f32 %v2245_v48, 0.0 }
 0x465   : > { %2493 = vmatpush.msrb.mxu2 %v2431_v40  ;;  %v2411_v40 = vmax.f32 %v2243_v62, 0.0 }
 0x466   : > { %v4425_v22 = vpop.f32.mrf.mxu0  ;;  %v4427_v4 = vpop.f32.mrf.mxu1 }
 0x467   : > { %4653 = vst [vmem:[#allocation15_spill] sm:$0xff] %v4425_v22  ;;  %2494 = vmatpush.msrb.mxu2 %v2429_v43 }
 0x468   : > { %4654 = vst [vmem:[#allocation7_spill] sm:$0xff] %v4427_v4 }
 0x469   : > { %2495 = vmatpush.msrb.mxu2 %v2427_v51 }
 0x46b   : > { %2496 = vmatpush.msrb.mxu2 %v2425_v60 }
 0x46d   : > { %2497 = vmatpush.msrb.mxu2 %v2423_v45 }
 0x46e   : > { %v4441_v44 = vpop.f32.mrf.mxu0  ;;  %v4443_v35 = vpop.f32.mrf.mxu1 }
 0x46f   : > { %4656 = vst [vmem:[#allocation9_spill] sm:$0xff] %v4441_v44  ;;  %2498 = vmatpush.msrb.mxu2 %v2421_v12 }
 0x470   : > { %4657 = vst [vmem:[#allocation10_spill] sm:$0xff] %v4443_v35 }
 0x471   : > { %2375 = vmatmul.bf16.gmra.mxu1 %v4302_v47  ;;  %2499 = vmatpush.msrb.mxu2 %v2419_v5  ;;  %v4624_v47 = vperm.slane %v4459_v37, 0 }
 0x473   : > { %2500 = vmatpush.msrb.mxu2 %v2417_v38 }
 0x475   : > { %2501 = vmatpush.msrb.mxu2 %v2415_v18 }
 0x476   : > { %v4461_v25 = vpop.f32.mrf.mxu0  ;;  %v4463_v21 = vpop.f32.mrf.mxu1 }
 0x477   : > { %2502 = vmatpush.msrb.mxu2 %v2413_v2 }
 0x479   : > { %2503 = vmatpush.msrb.mxu2 %v2411_v40 }
 0x47a   : > { %2504 = vmatmul.f32.vlgmr.msrb.gmra.mxu2 %v4624_v47 }
 0x47e   : > { %v4468_v28 = vpop.f32.mrf.mxu0  ;;  %v4470_v41 = vpop.f32.mrf.mxu1 }
 0x481   : > { %2380 = vmatmul.bf16.gmra.mxu1 %v4313_v3 }
 0x486   : > { %v4473_v43 = vpop.f32.mrf.mxu0  ;;  %v4475_v20 = vpop.f32.mrf.mxu1 }
 0x48e   : > { %v4477_v51 = vpop.f32.mrf.mxu0  ;;  %v4479_v0 = vpop.f32.mrf.mxu1 }
 0x491   : > { %2385 = vmatmul.bf16.gmra.mxu1 %v4324_v11 }
 0x496   : > { %v2299_v60 = vpop.f32.mrf.mxu0  ;;  %v2348_v54 = vpop.f32.mrf.mxu1 }
 0x49e   : > { %v2302_v45 = vpop.f32.mrf.mxu0  ;;  %v2351_v19 = vpop.f32.mrf.mxu1 }
 0x4a1   : > { %2390 = vmatmul.bf16.gmra.mxu1 %v4341_v7 }
 0x4a6   : > { %v2304_v12 = vpop.f32.mrf.mxu0  ;;  %v2353_v42 = vpop.f32.mrf.mxu1 }
 0x4ae   : > { %v2307_v5 = vpop.f32.mrf.mxu0  ;;  %v2356_v3 = vpop.f32.mrf.mxu1 }
 0x4b1   : > { %2395 = vmatmul.bf16.gmra.mxu1 %v4358_v16 }
 0x4b6   : > { %v2309_v48 = vpop.f32.mrf.mxu0  ;;  %v2358_v38 = vpop.f32.mrf.mxu1 }
 0x4be   : > { %v2312_v62 = vpop.f32.mrf.mxu0  ;;  %v2361_v18 = vpop.f32.mrf.mxu1 }
 0x4bf   : > { %v2313_v35 = vadd.f32 %v2312_v62, %v4353_v39 }
 0x4c1   : > { %2400 = vmatmul.bf16.gmra.mxu1 %v4375_v26  ;;  %v2467_v62 = vmax.f32 %v2313_v35, 0.0  ;;  %v2349_v35 = vadd.f32 %v2348_v54, %v4383_v1  ;;  %v2295_v1 = vadd.f32 %v4473_v43, %v4418_v36  ;;  %v2290_v43 = vadd.f32 %v4461_v25, %v4431_v24  ;;  %v4532_v25 = vpop.permute.xlu0 %2064 }
 0x4c6   : > { %v2314_v2 = vpop.f32.mrf.mxu0  ;;  %v2363_v11 = vpop.f32.mrf.mxu1 }
 0x4c7   : > { %v2315_v4 = vadd.f32 %v2314_v2, %v4351_v34  ;;  %v2364_v26 = vadd.f32 %v2363_v11, %v4343_v8  ;;  %v2308_v8 = vadd.f32 %v2307_v5, %v4370_v57 }
 0x4ce   : > { %v2317_v40 = vpop.f32.mrf.mxu0  ;;  %v2366_v47 = vpop.f32.mrf.mxu1 }
 0x4cf   : > { %v2318_v31 = vadd.f32 %v2317_v40, %v4349_v27  ;;  %v2367_v17 = vadd.f32 %v2366_v47, %v4336_v63  ;;  %v2310_v63 = vadd.f32 %v2309_v48, %v4368_v61  ;;  %v2469_v47 = vmax.f32 %v2315_v4, 0.0 }
 0x4d0   : > { %v2303_v4 = vadd.f32 %v2302_v45, %v4392_v14  ;;  %v2426_v48 = vmax.f32 %v2349_v35, 0.0 }
 0x4d1   : > { %2405 = vmatmul.bf16.gmra.mxu1 %v4390_v30  ;;  %v2362_v30 = vadd.f32 %v2361_v18, %v4345_v52  ;;  %v2471_v9 = vmax.f32 %v2318_v31, 0.0  ;;  %v2440_v44 = vmax.f32 %v2367_v17, 0.0  ;;  %v2305_v31 = vadd.f32 %v2304_v12, %v4377_v29 }
 0x4d2   : > { %v2459_v45 = vmax.f32 %v2303_v4, 0.0 }
 0x4d3   : > { %v2436_v52 = vmax.f32 %v2362_v30, 0.0  ;;  %v2461_v5 = vmax.f32 %v2305_v31, 0.0  ;;  %v4665_v30 = vld [vmem:[#allocation14_spill] sm:$0xff]  ;;  %v4669_v31 = vld [vmem:[#allocation11_spill] sm:$0xff] }
 0x4d6   : > { %v2319_v37 = vpop.f32.mrf.mxu0  ;;  %v2368_v7 = vpop.f32.mrf.mxu1 }
 0x4d7   : > { %v2320_v16 = vadd.f32 %v2319_v37, %v4334_v53  ;;  %v2369_v33 = vadd.f32 %v2368_v7, %v4330_v46  ;;  %v2359_v37 = vadd.f32 %v2358_v38, %v4360_v56  ;;  %v2438_v46 = vmax.f32 %v2364_v26, 0.0 }
 0x4d9   : > { %v2473_v32 = vmax.f32 %v2320_v16, 0.0  ;;  %v2442_v22 = vmax.f32 %v2369_v33, 0.0  ;;  %v2357_v33 = vadd.f32 %v2356_v3, %v4364_v10  ;;  %v2434_v56 = vmax.f32 %v2359_v37, 0.0  ;;  %v4512_v3 = vpop.permute.xlu1 %2069 }
 0x4da   : > { %v2300_v10 = vadd.f32 %v2299_v60, %v4394_v58  ;;  %v2344_v60 = vadd.f32 %v4475_v20, %v4402_v15  ;;  %v2339_v15 = vadd.f32 %v4463_v21, %v4408_v50  ;;  %v2453_v20 = vmax.f32 %v2295_v1, 0.0  ;;  %v4664_v50 = vld [vmem:[#allocation15_spill] sm:$0xff] }
 0x4db   : > { %2508 = vmatpush.msrb.mxu3 %v2473_v32  ;;  %2528 = vmatpush.msra.mxu2 %v2442_v22  ;;  %v2354_v22 = vadd.f32 %v2353_v42, %v4366_v49  ;;  %v2465_v32 = vmax.f32 %v2310_v63, 0.0  ;;  %v2432_v17 = vmax.f32 %v2357_v33, 0.0  ;;  %v2298_v42 = vadd.f32 %v4477_v51, %v4398_v13  ;;  %v4666_v63 = vld [vmem:[#allocation7_spill] sm:$0xff]  ;;  %v4667_v33 = vld [vmem:[#allocation12_spill] sm:$0xff] }
 0x4dc   : > { %v2457_v54 = vmax.f32 %v2300_v10, 0.0  ;;  %v2293_v51 = vadd.f32 %v4468_v28, %v4421_v23  ;;  %v2422_v18 = vmax.f32 %v2344_v60, 0.0  ;;  %v4661_v28 = vld [vmem:[#allocation9_spill] sm:$0xff]  ;;  %v2285_v21 = vadd.f32 %v4664_v50, %v4532_v25 }
 0x4dd   : > { %2509 = vmatpush.msrb.mxu3 %v2471_v9  ;;  %2529 = vmatpush.msra.mxu2 %v2440_v44  ;;  %v2352_v9 = vadd.f32 %v2351_v19, %v4381_v59  ;;  %v2463_v44 = vmax.f32 %v2308_v8, 0.0  ;;  %v2430_v12 = vmax.f32 %v2354_v22, 0.0  ;;  %v2347_v59 = vadd.f32 %v4479_v0, %v4385_v6 }
 0x4de   : > { %v4496_v2 = vpop.f32.mrf.mxu1  ;;  %v2342_v6 = vadd.f32 %v4470_v41, %v4405_v55  ;;  %v2455_v0 = vmax.f32 %v2298_v42, 0.0  ;;  %v2288_v40 = vadd.f32 %v4661_v28, %v4512_v3  ;;  %v4662_v55 = vld [vmem:[#allocation8_spill] sm:$0xff]  ;;  %v4663_v41 = vld [vmem:[#allocation10_spill] sm:$0xff]  ;;  %v2451_v16 = vmax.f32 %v2293_v51, 0.0 }
 0x4df   : > { %2510 = vmatpush.msrb.mxu3 %v2469_v47  ;;  %2530 = vmatpush.msra.mxu2 %v2438_v46  ;;  %v2428_v19 = vmax.f32 %v2352_v9, 0.0  ;;  %v2424_v38 = vmax.f32 %v2347_v59, 0.0  ;;  %v2337_v7 = vadd.f32 %v4663_v41, %v4662_v55  ;;  %v2334_v37 = vadd.f32 %v4666_v63, %v4665_v30 }
 0x4e0   : > { %v2420_v26 = vmax.f32 %v2342_v6, 0.0  ;;  %v2449_v47 = vmax.f32 %v2290_v43, 0.0  ;;  %v2418_v46 = vmax.f32 %v2339_v15, 0.0  ;;  %v2445_v4 = vmax.f32 %v2285_v21, 0.0 }
 0x4e1   : > { %2511 = vmatpush.msrb.mxu3 %v2467_v62  ;;  %2531 = vmatpush.msra.mxu2 %v2436_v52  ;;  %v4538_v8 = vpop.permute.xlu1 %2059  ;;  %v4668_v52 = vld [vmem:[#allocation13_spill] sm:$0xff]  ;;  %v2414_v9 = vmax.f32 %v2334_v37, 0.0 }
 0x4e2   : > { %v2283_v62 = vadd.f32 %v4667_v33, %v4538_v8  ;;  %v2332_v22 = vadd.f32 %v4669_v31, %v4668_v52 }
 0x4e3   : > { %2512 = vmatpush.msrb.mxu3 %v2465_v32  ;;  %2532 = vmatpush.msra.mxu2 %v2434_v56  ;;  %v2447_v32 = vmax.f32 %v2288_v40, 0.0  ;;  %v2416_v56 = vmax.f32 %v2337_v7, 0.0 }
 0x4e4   : > { %v2443_v35 = vmax.f32 %v2283_v62, 0.0 }
 0x4e5   : > { %2513 = vmatpush.msrb.mxu3 %v2463_v44  ;;  %2533 = vmatpush.msra.mxu2 %v2432_v17  ;;  %v4670_v17 = vld [vmem:[#allocation16_spill] sm:$0xff] }
 0x4e6   : > { %v4506_v49 = vpop.f32.mrf.mxu1  ;;  %v2485_v10 = vperm.slane %v4670_v17, 1 }
 0x4e7   : > { %2514 = vmatpush.msrb.mxu3 %v2461_v5  ;;  %2534 = vmatpush.msra.mxu2 %v2430_v12  ;;  %v2412_v5 = vmax.f32 %v2332_v22, 0.0  ;;  %v4671_v12 = vperm.slane %v4670_v17, 0 }
 0x4e9   : > { %2515 = vmatpush.msrb.mxu3 %v2459_v45  ;;  %2535 = vmatpush.msra.mxu2 %v2428_v19 }
 0x4eb   : > { %2516 = vmatpush.msrb.mxu3 %v2457_v54  ;;  %2536 = vmatpush.msra.mxu2 %v2426_v48 }
 0x4ed   : > { %2517 = vmatpush.msrb.mxu3 %v2455_v0  ;;  %2537 = vmatpush.msra.mxu2 %v2424_v38 }
 0x4ee   : > { %v4526_v11 = vpop.f32.mrf.mxu1 }
 0x4ef   : > { %2518 = vmatpush.msrb.mxu3 %v2453_v20  ;;  %2538 = vmatpush.msra.mxu2 %v2422_v18 }
 0x4f1   : > { %2519 = vmatpush.msrb.mxu3 %v2451_v16  ;;  %2539 = vmatpush.msra.mxu2 %v2420_v26 }
 0x4f3   : > { %2520 = vmatpush.msrb.mxu3 %v2449_v47  ;;  %2540 = vmatpush.msra.mxu2 %v2418_v46 }
 0x4f5   : > { %2521 = vmatpush.msrb.mxu3 %v2447_v32  ;;  %2541 = vmatpush.msra.mxu2 %v2416_v56 }
 0x4f6   : > { %v2378_v44 = vpop.f32.mrf.mxu1 }
 0x4f7   : > { %2522 = vmatpush.msrb.mxu3 %v2445_v4  ;;  %2542 = vmatpush.msra.mxu2 %v2414_v9 }
 0x4f9   : > { %2523 = vmatpush.msrb.mxu3 %v2443_v35  ;;  %2543 = vmatpush.msra.mxu2 %v2412_v5 }
 0x4fa   : > { %2524 = vmatmul.f32.vlgmr.msrb.gmra.mxu3 %v2485_v10  ;;  %2544 = vmatmul.f32.vlgmr.msra.gmra.mxu2 %v4671_v12 }
 0x4fe   : > { %v2381_v42 = vpop.f32.mrf.mxu1 }
 0x506   : > { %v2383_v59 = vpop.f32.mrf.mxu1 }
 0x50e   : > { %v2386_v45 = vpop.f32.mrf.mxu1 }
 0x516   : > { %v2388_v19 = vpop.f32.mrf.mxu1 }
 0x51e   : > { %v2391_v1 = vpop.f32.mrf.mxu1 }
 0x526   : > { %v2393_v60 = vpop.f32.mrf.mxu1 }
 0x527   : > { %v2394_v26 = vadd.f32 %v2393_v60, %v4377_v29  ;;  %v2382_v29 = vadd.f32 %v2381_v42, %v4421_v23 }
 0x529   : > { %v2462_v50 = vmax.f32 %v2394_v26, 0.0  ;;  %v2452_v47 = vmax.f32 %v2382_v29, 0.0 }
 0x52e   : > { %v2396_v54 = vpop.f32.mrf.mxu1 }
 0x52f   : > { %v2397_v7 = vadd.f32 %v2396_v54, %v4370_v57  ;;  %v2384_v57 = vadd.f32 %v2383_v59, %v4418_v36  ;;  %v2372_v36 = vadd.f32 %v4496_v2, %v4538_v8 }
 0x531   : > { %v2454_v37 = vmax.f32 %v2384_v57, 0.0 }
 0x536   : > { %v2398_v48 = vpop.f32.mrf.mxu1 }
 0x537   : > { %v2399_v55 = vadd.f32 %v2398_v48, %v4368_v61  ;;  %v2387_v61 = vadd.f32 %v2386_v45, %v4398_v13  ;;  %v2374_v13 = vadd.f32 %v4506_v49, %v4532_v25 }
 0x539   : > { %v2456_v63 = vmax.f32 %v2387_v61, 0.0  ;;  %v2446_v33 = vmax.f32 %v2374_v13, 0.0 }
 0x53e   : > { %v2401_v51 = vpop.f32.mrf.mxu1 }
 0x53f   : > { %v2402_v28 = vadd.f32 %v2401_v51, %v4353_v39  ;;  %v2389_v39 = vadd.f32 %v2388_v19, %v4394_v58  ;;  %v2377_v58 = vadd.f32 %v4526_v11, %v4512_v3  ;;  %v2480_v3 = vpop.permute.xlu2 %2479  ;;  %v2505_v11 = vpop.f32.mrf.mxu2 }
 0x540   : > { %v2482_v62 = vperm.slane %v2480_v3, 0 }
 0x541   : > { %v2468_v16 = vmax.f32 %v2402_v28, 0.0  ;;  %v2458_v30 = vmax.f32 %v2389_v39, 0.0  ;;  %v2448_v23 = vmax.f32 %v2377_v58, 0.0 }
 0x542   : > { %v2506_v49 = vadd.f32 %v2505_v11, %v2482_v62 }
 0x546   : > { %v2403_v6 = vpop.f32.mrf.mxu1 }
 0x547   : > { %v2404_v20 = vadd.f32 %v2403_v6, %v4351_v34  ;;  %v2464_v34 = vmax.f32 %v2397_v7, 0.0 }
 0x549   : > { %v2470_v41 = vmax.f32 %v2404_v20, 0.0 }
 0x54e   : > { %v2406_v0 = vpop.f32.mrf.mxu1 }
 0x54f   : > { %v2407_v43 = vadd.f32 %v2406_v0, %v4349_v27  ;;  %v2466_v27 = vmax.f32 %v2399_v55, 0.0 }
 0x551   : > { %v2472_v40 = vmax.f32 %v2407_v43, 0.0 }
 0x556   : > { %v2408_v38 = vpop.f32.mrf.mxu1 }
 0x557   : > { %v2409_v15 = vadd.f32 %v2408_v38, %v4334_v53  ;;  %v2392_v53 = vadd.f32 %v2391_v1, %v4392_v14  ;;  %v2379_v14 = vadd.f32 %v2378_v44, %v4431_v24  ;;  %v2444_v24 = vmax.f32 %v2372_v36, 0.0 }
 0x559   : > { %v2474_v18 = vmax.f32 %v2409_v15, 0.0  ;;  %v2460_v21 = vmax.f32 %v2392_v53, 0.0  ;;  %v2450_v46 = vmax.f32 %v2379_v14, 0.0  ;;  %v2604_v15 = vlaneseq }
 0x55b   : > { %2548 = vmatpush.msra.mxu3 %v2474_v18  ;;  %vm2606_vm3 = vcmp.lt.s32.totalorder %v2604_v15, 256 }
 0x55d   : > { %2549 = vmatpush.msra.mxu3 %v2472_v40 }
 0x55f   : > { %2550 = vmatpush.msra.mxu3 %v2470_v41 }
 0x561   : > { %2551 = vmatpush.msra.mxu3 %v2468_v16 }
 0x563   : > { %2552 = vmatpush.msra.mxu3 %v2466_v27 }
 0x565   : > { %2553 = vmatpush.msra.mxu3 %v2464_v34 }
 0x567   : > { %2554 = vmatpush.msra.mxu3 %v2462_v50 }
 0x569   : > { %2555 = vmatpush.msra.mxu3 %v2460_v21 }
 0x56b   : > { %2556 = vmatpush.msra.mxu3 %v2458_v30 }
 0x56d   : > { %2557 = vmatpush.msra.mxu3 %v2456_v63 }
 0x56f   : > { %2558 = vmatpush.msra.mxu3 %v2454_v37 }
 0x571   : > { %2559 = vmatpush.msra.mxu3 %v2452_v47 }
 0x573   : > { %2560 = vmatpush.msra.mxu3 %v2450_v46 }
 0x575   : > { %2561 = vmatpush.msra.mxu3 %v2448_v23 }
 0x577   : > { %2562 = vmatpush.msra.mxu3 %v2446_v33 }
 0x579   : > { %2563 = vmatpush.msra.mxu3 %v2444_v24 }
 0x57a   : > { %2564 = vmatmul.f32.vlgmr.msra.gmra.mxu3 %v2485_v10 }
 0x57d   : > { %v2525_v52 = vpop.f32.mrf.mxu3  ;;  %v2545_v32 = vpop.f32.mrf.mxu2 }
 0x57e   : > { %v2526_v25 = vadd.f32 %v2525_v52, %v2506_v49  ;;  %v2546_v8 = vadd.f32 %v2545_v32, %v2482_v62 }
 0x580   : > { %v2570_v31 = vand.u32 2147483647, %v2526_v25  ;;  %v2568_v28 = vmax.f32 %v2526_v25, 0.0 }
 0x582   : > { %v2572_v22 = vsub.f32 0.0, %v2570_v31 }
 0x584   : > { %v2574_v2 = vmul.f32 1.442695, %v2572_v22 }
 0x586   : > { %3075 = vpow2.f32 %v2574_v2 }
 0x58c   : > { %v3076_v35 = vpop.eup %3075 }
 0x58d   : > { %v2578_v10 = vadd.f32 1.0, %v3076_v35  ;;  %v2581_v42 = vmul.f32 -0.5, %v3076_v35  ;;  %v2584_v60 = vand.u32 2147483647, %v3076_v35 }
 0x58f   : > { %v2582_v19 = vadd.f32 1.0, %v2581_v42  ;;  %vm2585_vm0 = vcmp.lt.f32.partialorder %v2584_v60, 0.0004427343 }
 0x591   : > { %v2583_v6 = vmul.f32 %v3076_v35, %v2582_v19 }
 0x5fd   : > { %v2565_v56 = vpop.f32.mrf.mxu3 }
 0x5fe   : > { %v2566_v4 = vadd.f32 %v2565_v56, %v2546_v8 }
 0x600   : > { %v2571_v9 = vand.u32 2147483647, %v2566_v4  ;;  %v2569_v43 = vmax.f32 %v2566_v4, 0.0 }
 0x602   : > { %v2573_v44 = vsub.f32 0.0, %v2571_v9 }
 0x604   : > { %v2576_v17 = vmul.f32 1.442695, %v2573_v44 }
 0x606   : > { %3077 = vpow2.f32 %v2576_v17 }
 0x607   : > { %3079 = vlog2.f32 %v2578_v10 }
 0x60c   : > { %v3078_v5 = vpop.eup %3077 }
 0x60d   : > { %v2587_v12 = vadd.f32 1.0, %v3078_v5  ;;  %v2590_v59 = vmul.f32 -0.5, %v3078_v5  ;;  %v3080_v45 = vpop.eup %3079  ;;  %v2593_v54 = vand.u32 2147483647, %v3078_v5 }
 0x60e   : > { %v2580_v48 = vmul.f32 0.6931472, %v3080_v45 }
 0x60f   : > { %3081 = vlog2.f32 %v2587_v12  ;;  %v2591_v1 = vadd.f32 1.0, %v2590_v59  ;;  %vm2594_vm1 = vcmp.lt.f32.partialorder %v2593_v54, 0.0004427343 }
 0x610   : > { %v2586_v20 = vsel %vm2585_vm0, %v2583_v6, %v2580_v48 }
 0x611   : > { %v2592_v38 = vmul.f32 %v3078_v5, %v2591_v1  ;;  %v2596_v55 = vadd.f32 %v2586_v20, %v2568_v28 }
 0x615   : > { %v3082_v51 = vpop.eup %3081 }
 0x616   : > { %v2589_v0 = vmul.f32 0.6931472, %v3082_v51 }
 0x618   : > { %v2595_v18 = vsel %vm2594_vm1, %v2592_v38, %v2589_v0 }
 0x619   : > { %v2597_v40 = vadd.f32 %v2595_v18, %v2569_v43 }
 0x61b   : > { %v2600_v41 = vrot.slane %v2597_v40, 7 }
 0x61d   : > { %v2602_v7 = vsel %vm2601_vm2, %v2596_v55, %v2600_v41 }
 0x61e   : > { %2608 = vst.msk [vmem:[%s421_s27] sm:$0x3] %vm2606_vm3, %v2602_v7 }
 0x61f   : > { %3110 = shalt.err (!%p3107_p5)
}
 0x620   : > { %2986 = dma.vmem_to_hbm [thread:$0]  (%p3268_p4), %s2625_s22, 32, %s2627_s13, %s2610_s14  }
 0x621 PF: > { %p2992_p6 = scmp.ge.s32.totalorder %s3161_s24, 2  ;;  %s2638_s16 = sand.u32 1, %s3141_s19  }
 0x622   : > { %s2639_s27 = scalar_lea.sflag [#allocation4], %s2638_s16 }
 0x623   : > { %p2989_p7 = pnand %p2992_p6, %p3275_p8 }
 0x625   : > { %p2990_p9 = pneg %p2989_p7 }
 0x627   : > { %3136 = dma.done.wait (%p2990_p9), %s2639_s27, 32  }
 0x628   : > { %3138 = vsyncadd (%p2990_p9), %s2639_s27, 4294967264  ;;  %s26_s24 = sadd.s32 1, %s3161_s24   ;;  %s4672_s28 = sld [smem:[#allocation6_spill]] }
 0x629   : > { %p23_p10 = scmp.ge.s32.totalorder %s26_s24, 4   ;;  %s4673_s19 = smov %s3145_s20 }
 0x62a   : > { %s4674_s20 = smov %s3149_s21  ;;  %s4675_s21 = smov %s3281_s12 }
 0x62b   : > { %s4676_s22 = smov %s3157_s23  ;;  %25 = sbr.rel (!%p23_p10) target bundleno = 7 (0x7), region = 102 }
 0x62e   : > { %s4677_s23 = smov %s4672_s28 }
 0x630   :  { %2645 = vsyncpa [#allocation4], 1 }
 0x631   :  { %2647 = vsyncpa [#allocation4 + $0x1], 1 }

</bundles_post_ra>
